<compile_context>
chip_gen: v7x
topology: tpu7x:2x2x1
jax: 0.10.0
libtpu: 0.0.40
codegen_flags: <defaults>
</compile_context>

<pallas_src>
import functools
import math

import jax
import jax.numpy as jnp
from jax import lax
from jax.experimental import pallas as pl
from jax.experimental.pallas import tpu as pltpu

_LANE = 128
_SUBLANE = 8
_MXU = 256                       # K/N alignment for the 256-wide MXU (v6e/v7x)
_VMEM_LIMIT = 48 * 1024 * 1024   # headroom under v7x's 64 MiB physical VMEM
_GELU_C = math.sqrt(2.0 / math.pi)


def _round_up(x, m):
    return ((x + m - 1) // m) * m


def _choose_tile(dim, pref, unit, base):
    """Pick a tile (multiple of `base`, preferably of `unit`) and the padded
    dim it divides.  Prefers exact divisors of `dim` (no padding); only pads
    (e.g. vocab 50257 -> 50688) when no aligned divisor exists."""
    pref = max(pref, base)
    if dim <= pref:
        t = _round_up(dim, base)
        return t, t
    t = (pref // unit) * unit
    while t >= unit:                       # unit-aligned divisor: no padding
        if dim % t == 0:
            return t, dim
        t -= unit
    t = (pref // base) * base
    while t >= base:                       # base-aligned divisor: no padding
        if dim % t == 0:
            return t, dim
        t -= base
    t = (pref // unit) * unit              # no divisor: pad up
    return t, _round_up(dim, t)


def _pick_seq_tile(dim, pref):
    """Divisor-or-full tile for the attention sequence axis (never padded)."""
    if dim <= pref:
        return dim
    t = (pref // _SUBLANE) * _SUBLANE
    while t >= _SUBLANE:
        if dim % t == 0:
            return t
        t -= _SUBLANE
    return dim


# ---------------- fused tiled linear (LayerNorm + matmul + bias/GELU/residual)

def _make_linear_kernel(activation, with_ln, with_bias, with_residual, multi_k):
    def kernel(*refs):
        it = iter(refs)
        x_ref = next(it)
        w_ref = next(it)
        g_ref = next(it) if with_ln else None
        bln_ref = next(it) if with_ln else None
        bias_ref = next(it) if with_bias else None
        res_ref = next(it) if with_residual else None
        o_ref = next(it)
        acc_ref = next(it) if multi_k else None

        def load_x():
            x = x_ref[...]
            if not with_ln:
                return x
            # fused pre-LayerNorm over the full feature row (btk == K)
            xf = x.astype(jnp.float32)
            mean = jnp.mean(xf, axis=-1, keepdims=True)
            var = jnp.mean(jnp.square(xf - mean), axis=-1, keepdims=True)
            xn = (xf - mean) * lax.rsqrt(var + 1e-5)
            xn = xn * g_ref[...].astype(jnp.float32) + bln_ref[...].astype(jnp.float32)
            return xn.astype(x.dtype)

        def finalize(h):
            if with_bias:
                h = h + bias_ref[...].astype(jnp.float32)
            if activation == "gelu":
                h = 0.5 * h * (1.0 + jnp.tanh(
                    _GELU_C * (h + 0.044715 * h * h * h)))
            if with_residual:
                h = h + res_ref[...].astype(jnp.float32)
            o_ref[...] = h.astype(o_ref.dtype)

        if multi_k:
            k_step = pl.program_id(2)

            @pl.when(k_step == 0)
            def _():
                acc_ref[...] = jnp.zeros_like(acc_ref)

            acc_ref[...] += jnp.dot(load_x(), w_ref[...],
                                    preferred_element_type=jnp.float32)

            @pl.when(k_step == pl.num_programs(2) - 1)
            def _():
                finalize(acc_ref[...])
        else:
            # single K step: no f32 accumulator round-trip at all
            finalize(jnp.dot(load_x(), w_ref[...],
                             preferred_element_type=jnp.float32))

    return kernel


def pallas_linear(x, w, b=None, residual=None, ln=None, activation=None,
                  out_dtype=None, tm=512, tn=512, tk=4096):
    m, kdim = x.shape
    kw, n = w.shape
    assert kw == kdim
    out_dtype = out_dtype or x.dtype

    btm, m_pad = _choose_tile(m, tm, _SUBLANE, _SUBLANE)
    if ln is not None:
        btk, k_pad = kdim, kdim            # LayerNorm needs the full feature row
    else:
        btk, k_pad = _choose_tile(kdim, tk, _MXU, _LANE)
    btn, n_pad = _choose_tile(n, tn, _MXU, _LANE)

    if m_pad != m:
        x = jnp.pad(x, ((0, m_pad - m), (0, 0)))
        if residual is not None:
            residual = jnp.pad(residual, ((0, m_pad - m), (0, 0)))
    if k_pad != kdim:
        x = jnp.pad(x, ((0, 0), (0, k_pad - kdim)))
        w = jnp.pad(w, ((0, k_pad - kdim), (0, 0)))
    if n_pad != n:
        # TODO(synk): pre-pad the LM-head weight once at init instead of per call.
        w = jnp.pad(w, ((0, 0), (0, n_pad - n)))
        if b is not None:
            b = jnp.pad(b, (0, n_pad - n))
        if residual is not None:
            residual = jnp.pad(residual, ((0, 0), (0, n_pad - n)))

    k_steps = k_pad // btk
    multi_k = k_steps > 1
    grid = (m_pad // btm, n_pad // btn, k_steps)

    # TODO(synk): pipeline_mode=pl.Buffered(3) on the weight spec helps v5e's
    # weight-DMA-bound regime; left at default double buffering here.
    in_specs = [pl.BlockSpec((btm, btk), lambda i, j, k: (i, k)),
                pl.BlockSpec((btk, btn), lambda i, j, k: (k, j))]
    operands = [x, w]
    if ln is not None:
        g, beta = ln
        in_specs += [pl.BlockSpec((1, btk), lambda i, j, k: (0, 0)),
                     pl.BlockSpec((1, btk), lambda i, j, k: (0, 0))]
        operands += [g.reshape(1, -1), beta.reshape(1, -1)]
    if b is not None:
        in_specs.append(pl.BlockSpec((1, btn), lambda i, j, k: (0, j)))
        operands.append(b.reshape(1, -1))
    if residual is not None:
        in_specs.append(pl.BlockSpec((btm, btn), lambda i, j, k: (i, j)))
        operands.append(residual)

    kernel = _make_linear_kernel(activation, ln is not None, b is not None,
                                 residual is not None, multi_k)
    scratch = [pltpu.VMEM((btm, btn), jnp.float32)] if multi_k else []

    out = pl.pallas_call(
        kernel,
        out_shape=jax.ShapeDtypeStruct((m_pad, n_pad), out_dtype),
        grid=grid,
        in_specs=in_specs,
        out_specs=pl.BlockSpec((btm, btn), lambda i, j, k: (i, j)),
        scratch_shapes=scratch,
        compiler_params=pltpu.CompilerParams(
            dimension_semantics=("parallel", "parallel", "arbitrary"),
            vmem_limit_bytes=_VMEM_LIMIT),
    )(*operands)

    if m_pad != m or n_pad != n:
        out = out[:m, :n]
    return out


# --------------------------------------------- flash-style causal attention -

def _flash_attn_kernel(q_ref, k_ref, v_ref, o_ref, m_ref, l_ref, acc_ref,
                       *, scale, n_heads, d_head, ts):
    iq = pl.program_id(1)
    ik = pl.program_id(2)

    @pl.when(ik == 0)
    def _():
        m_ref[...] = jnp.full_like(m_ref, -jnp.inf)
        l_ref[...] = jnp.zeros_like(l_ref)
        acc_ref[...] = jnp.zeros_like(acc_ref)

    # Strictly-upper-triangular kv tiles are compute-skipped here; their K/V
    # DMAs are also elided because the kv index_map clamps to min(ik, iq).
    @pl.when(ik <= iq)
    def _():
        row = iq * ts + lax.broadcasted_iota(jnp.int32, (ts, ts), 0)
        col = ik * ts + lax.broadcasted_iota(jnp.int32, (ts, ts), 1)
        masked = col > row
        q = q_ref[0]          # (ts, D) slab, all heads
        k = k_ref[0]
        v = v_ref[0]
        for h in range(n_heads):              # unrolled static head loop
            hs = slice(h * d_head, (h + 1) * d_head)
            s = lax.dot_general(q[:, hs], k[:, hs], (((1,), (1,)), ((), ())),
                                preferred_element_type=jnp.float32) * scale
            s = jnp.where(masked, -jnp.inf, s)
            m_prev = m_ref[h]
            m_new = jnp.maximum(m_prev, jnp.max(s, axis=-1, keepdims=True))
            alpha = jnp.exp(m_prev - m_new)
            p = jnp.exp(s - m_new)
            l_ref[h] = alpha * l_ref[h] + jnp.sum(p, axis=-1, keepdims=True)
            acc_ref[h] = alpha * acc_ref[h] + lax.dot_general(
                p.astype(v.dtype), v[:, hs], (((1,), (0,)), ((), ())),
                preferred_element_type=jnp.float32)
            m_ref[h] = m_new

    @pl.when(ik == pl.num_programs(2) - 1)
    def _():
        # all heads written into one lane-dense (ts, D) output slab
        for h in range(n_heads):
            hs = slice(h * d_head, (h + 1) * d_head)
            inv_l = pl.reciprocal(l_ref[h], approx=True)
            o_ref[0, :, hs] = (acc_ref[h] * inv_l).astype(o_ref.dtype)


def pallas_flash_attention(qkv, n_heads, ts=256):
    """qkv: (B, S, 3D) fused projection -> causal attention context (B, S, D)."""
    B, S, three_d = qkv.shape
    D = three_d // 3
    assert 3 * D == three_d and D % n_heads == 0
    assert D % _LANE == 0, "emb_dim must be a multiple of 128 for the fused qkv layout"
    d_head = D // n_heads
    ts = _pick_seq_tile(S, ts)
    grid = (B, S // ts, S // ts)

    q_spec = pl.BlockSpec((1, ts, D), lambda b, iq, ik: (b, iq, 0))
    k_spec = pl.BlockSpec((1, ts, D), lambda b, iq, ik: (b, jnp.minimum(ik, iq), 1))
    v_spec = pl.BlockSpec((1, ts, D), lambda b, iq, ik: (b, jnp.minimum(ik, iq), 2))
    o_spec = pl.BlockSpec((1, ts, D), lambda b, iq, ik: (b, iq, 0))

    kernel = functools.partial(_flash_attn_kernel, scale=1.0 / math.sqrt(d_head),
                               n_heads=n_heads, d_head=d_head, ts=ts)
    return pl.pallas_call(
        kernel,
        out_shape=jax.ShapeDtypeStruct((B, S, D), qkv.dtype),
        grid=grid,
        in_specs=[q_spec, k_spec, v_spec],
        out_specs=o_spec,
        scratch_shapes=[pltpu.VMEM((n_heads, ts, 1), jnp.float32),
                        pltpu.VMEM((n_heads, ts, 1), jnp.float32),
                        pltpu.VMEM((n_heads, ts, d_head), jnp.float32)],
        compiler_params=pltpu.CompilerParams(
            dimension_semantics=("parallel", "parallel", "arbitrary"),
            vmem_limit_bytes=_VMEM_LIMIT),
    )(qkv, qkv, qkv)


# ----------------------------------------------------------- parameter init -

def init_params(cfg, key):
    V, D, C = cfg["vocab_size"], cfg["emb_dim"], cfg["context_length"]
    H4 = 4 * D
    n_layers = cfg["n_layers"]
    keys = iter(jax.random.split(key, 3 + 4 * n_layers))

    def nrm(shape):
        return (0.02 * jax.random.normal(next(keys), shape,
                                         dtype=jnp.float32)).astype(jnp.bfloat16)

    params = {
        "tok_emb": nrm((V, D)),
        "pos_emb": nrm((C, D)),
        "final_norm_g": jnp.ones((D,), jnp.float32),
        "final_norm_b": jnp.zeros((D,), jnp.float32),
        "out_head_w": nrm((D, V)),                      # Linear(D, V, bias=False)
        "layers": [],
    }
    for _ in range(n_layers):
        params["layers"].append({
            "ln1_g": jnp.ones((D,), jnp.float32),
            "ln1_b": jnp.zeros((D,), jnp.float32),
            "w_qkv": nrm((D, 3 * D)),                   # fused Q/K/V (qkv_bias=False)
            "wo": nrm((D, D)), "bo": jnp.zeros((D,), jnp.float32),
            "ln2_g": jnp.ones((D,), jnp.float32),
            "ln2_b": jnp.zeros((D,), jnp.float32),
            "w1": nrm((D, H4)), "b1": jnp.zeros((H4,), jnp.float32),
            "w2": nrm((H4, D)), "b2": jnp.zeros((D,), jnp.float32),
        })
    return params


# -------------------------------------------------------------- forward pass

def gpt_forward(params, in_idx, cfg):
    B, S = in_idx.shape
    D = cfg["emb_dim"]
    H = cfg["n_heads"]
    V = cfg["vocab_size"]

    # Embedding gather + positional add left to XLA (no tiled-Pallas win here).
    tok = jnp.take(params["tok_emb"], in_idx, axis=0)      # (B, S, D) bf16
    pos = params["pos_emb"][:S]                            # (S, D)    bf16
    x2 = (tok + pos[None, :, :]).reshape(B * S, D)         # bf16 residual stream
    # drop_emb / dropout layers: identity (inference)

    for lp in params["layers"]:
        # --- attention block: LN1 fused into QKV matmul; attention consumes
        #     the (B, S, 3D) slab directly (no XLA transposes) ---------------
        qkv = pallas_linear(x2, lp["w_qkv"],
                            ln=(lp["ln1_g"], lp["ln1_b"]))          # (B*S, 3D)
        ctx = pallas_flash_attention(qkv.reshape(B, S, 3 * D), H)   # (B, S, D)
        x2 = pallas_linear(ctx.reshape(B * S, D), lp["wo"], b=lp["bo"],
                           residual=x2)                 # out-proj + bias + residual

        # --- feed-forward block: LN2 + W1 + GELU fused, then W2 + residual --
        h = pallas_linear(x2, lp["w1"], b=lp["b1"], activation="gelu",
                          ln=(lp["ln2_g"], lp["ln2_b"]))
        x2 = pallas_linear(h, lp["w2"], b=lp["b2"], residual=x2)

    # final LayerNorm fused into the LM head
    logits = pallas_linear(x2, params["out_head_w"],
                           ln=(params["final_norm_g"], params["final_norm_b"]),
                           out_dtype=jnp.float32)
    return logits.reshape(B, S, V)


# ------------------------------------------------------------------- main ---

if __name__ == "__main__":
    cfg = {
        "vocab_size": 128,
        "context_length": 16,
        "emb_dim": 128,       # multiple of 128 so attention uses the fused-qkv layout
        "n_heads": 4,
        "n_layers": 2,
        "drop_rate": 0.0,     # dropout treated as identity (eval mode)
        "qkv_bias": False,
    }

    key = jax.random.PRNGKey(0)
    pkey, ikey = jax.random.split(key)
    params = init_params(cfg, pkey)

    B, S = 2, 8
    in_idx = jax.random.randint(ikey, (B, S), 0, cfg["vocab_size"],
                                dtype=jnp.int32)

    fwd = jax.jit(functools.partial(gpt_forward, cfg=cfg))
    logits = fwd(params, in_idx)
    jax.block_until_ready(logits)

    assert logits.shape == (B, S, cfg["vocab_size"])
    assert logits.dtype == jnp.float32
    assert bool(jnp.all(jnp.isfinite(logits)))
    print("KERNEL_OK")
</pallas_src>

<mosaic_0001>
module attributes {stable_mosaic.version = 11 : i64} {
  func.func @kernel(%arg0: i32, %arg1: i32, %arg2: i32, %arg3: memref<16x128xbf16, #tpu.memory_space<vmem>>, %arg4: memref<128x384xbf16, #tpu.memory_space<vmem>>, %arg5: memref<1x128xf32, #tpu.memory_space<vmem>>, %arg6: memref<1x128xf32, #tpu.memory_space<vmem>>, %arg7: memref<16x384xbf16, #tpu.memory_space<vmem>>) attributes {dimension_semantics = [#tpu.dimension_semantics<parallel>, #tpu.dimension_semantics<parallel>, #tpu.dimension_semantics<arbitrary>], iteration_bounds = array<i64: 1, 1, 1>, scalar_prefetch = 0 : i64, scratch_operands = 0 : i64, tpu.core_type = #tpu.core_type<tc>, window_params = [{transform_indices = @transform_0, window_bounds = array<i64: 16, 128>}, {transform_indices = @transform_1, window_bounds = array<i64: 128, 384>}, {pipeline_mode = #tpu.pipeline_mode<synchronous>, transform_indices = @transform_2, window_bounds = array<i64: 1, 128>}, {pipeline_mode = #tpu.pipeline_mode<synchronous>, transform_indices = @transform_3, window_bounds = array<i64: 1, 128>}, {transform_indices = @transform_4, window_bounds = array<i64: 16, 384>}]} {
    %c0 = arith.constant 0 : index
    %c0_0 = arith.constant 0 : index
    %0 = vector.load %arg3[%c0, %c0_0] : memref<16x128xbf16, #tpu.memory_space<vmem>>, vector<16x128xbf16>
    %1 = arith.extf %0 : vector<16x128xbf16> to vector<16x128xf32>
    %cst = arith.constant dense<0.000000e+00> : vector<16xf32>
    %2 = vector.multi_reduction <add>, %1, %cst [1] : vector<16x128xf32> to vector<16xf32>
    %3 = vector.shape_cast %2 : vector<16xf32> to vector<16x1xf32>
    %cst_1 = arith.constant 1.280000e+02 : f32
    %4 = vector.broadcast %cst_1 : f32 to vector<16x1xf32>
    %5 = arith.divf %3, %4 : vector<16x1xf32>
    %6 = vector.broadcast %5 : vector<16x1xf32> to vector<16x128xf32>
    %7 = arith.subf %1, %6 : vector<16x128xf32>
    %8 = arith.mulf %7, %7 : vector<16x128xf32>
    %cst_2 = arith.constant dense<0.000000e+00> : vector<16xf32>
    %9 = vector.multi_reduction <add>, %8, %cst_2 [1] : vector<16x128xf32> to vector<16xf32>
    %10 = vector.shape_cast %9 : vector<16xf32> to vector<16x1xf32>
    %cst_3 = arith.constant 1.280000e+02 : f32
    %11 = vector.broadcast %cst_3 : f32 to vector<16x1xf32>
    %12 = arith.divf %10, %11 : vector<16x1xf32>
    %13 = vector.broadcast %5 : vector<16x1xf32> to vector<16x128xf32>
    %14 = arith.subf %1, %13 : vector<16x128xf32>
    %cst_4 = arith.constant 9.99999974E-6 : f32
    %15 = vector.broadcast %cst_4 : f32 to vector<16x1xf32>
    %16 = arith.addf %12, %15 : vector<16x1xf32>
    %17 = math.rsqrt %16 : vector<16x1xf32>
    %18 = vector.broadcast %17 : vector<16x1xf32> to vector<16x128xf32>
    %19 = arith.mulf %14, %18 : vector<16x128xf32>
    %c0_5 = arith.constant 0 : index
    %c0_6 = arith.constant 0 : index
    %20 = vector.load %arg5[%c0_5, %c0_6] : memref<1x128xf32, #tpu.memory_space<vmem>>, vector<1x128xf32>
    %21 = vector.broadcast %20 : vector<1x128xf32> to vector<16x128xf32>
    %22 = arith.mulf %19, %21 : vector<16x128xf32>
    %c0_7 = arith.constant 0 : index
    %c0_8 = arith.constant 0 : index
    %23 = vector.load %arg6[%c0_7, %c0_8] : memref<1x128xf32, #tpu.memory_space<vmem>>, vector<1x128xf32>
    %24 = vector.broadcast %23 : vector<1x128xf32> to vector<16x128xf32>
    %25 = arith.addf %22, %24 : vector<16x128xf32>
    %26 = arith.truncf %25 : vector<16x128xf32> to vector<16x128xbf16>
    %c0_9 = arith.constant 0 : index
    %c0_10 = arith.constant 0 : index
    %27 = vector.load %arg4[%c0_9, %c0_10] : memref<128x384xbf16, #tpu.memory_space<vmem>>, vector<128x384xbf16>
    %cst_11 = arith.constant dense<0.000000e+00> : vector<16x384xf32>
    %28 = tpu.matmul %26, %27, %cst_11 {dimension_numbers = #tpu.dot_dimension_numbers<[1], [0], [0], [1], [0, 0, 1, 1], [], []>} : vector<16x128xbf16>, vector<128x384xbf16>, vector<16x384xf32> -> vector<16x384xf32>
    %29 = arith.truncf %28 : vector<16x384xf32> to vector<16x384xbf16>
    %c0_12 = arith.constant 0 : index
    %c0_13 = arith.constant 0 : index
    %30 = vector.load %arg7[%c0_12, %c0_13] : memref<16x384xbf16, #tpu.memory_space<vmem>>, vector<16x384xbf16>
    tpu.vector_store %arg7[%c0_12, %c0_13], %29 {strides = array<i32>} : memref<16x384xbf16, #tpu.memory_space<vmem>>, vector<16x384xbf16>,
    return
  }
  func.func @transform_0(%arg0: i32, %arg1: i32, %arg2: i32) -> (i32, i32) {
    %c0_i32 = arith.constant 0 : i32
    return %arg0, %arg2 : i32, i32
  }
  func.func @transform_1(%arg0: i32, %arg1: i32, %arg2: i32) -> (i32, i32) {
    %c0_i32 = arith.constant 0 : i32
    return %arg2, %arg1 : i32, i32
  }
  func.func @transform_2(%arg0: i32, %arg1: i32, %arg2: i32) -> (i32, i32) {
    %c0_i32 = arith.constant 0 : i32
    %c0_i32_0 = arith.constant 0 : i32
    %c0_i32_1 = arith.constant 0 : i32
    return %c0_i32, %c0_i32_0 : i32, i32
  }
  func.func @transform_3(%arg0: i32, %arg1: i32, %arg2: i32) -> (i32, i32) {
    %c0_i32 = arith.constant 0 : i32
    %c0_i32_0 = arith.constant 0 : i32
    %c0_i32_1 = arith.constant 0 : i32
    return %c0_i32, %c0_i32_0 : i32, i32
  }
  func.func @transform_4(%arg0: i32, %arg1: i32, %arg2: i32) -> (i32, i32) {
    %c0_i32 = arith.constant 0 : i32
    return %arg0, %arg1 : i32, i32
  }
}

module attributes {stable_mosaic.version = 11 : i64} {
  func.func @kernel(%arg0: i32, %arg1: i32, %arg2: i32, %arg3: memref<16x128xbf16, #tpu.memory_space<vmem>>, %arg4: memref<128x128xbf16, #tpu.memory_space<vmem>>, %arg5: memref<1x128xf32, #tpu.memory_space<vmem>>, %arg6: memref<16x128xbf16, #tpu.memory_space<vmem>>, %arg7: memref<16x128xbf16, #tpu.memory_space<vmem>>) attributes {dimension_semantics = [#tpu.dimension_semantics<parallel>, #tpu.dimension_semantics<parallel>, #tpu.dimension_semantics<arbitrary>], iteration_bounds = array<i64: 1, 1, 1>, scalar_prefetch = 0 : i64, scratch_operands = 0 : i64, tpu.core_type = #tpu.core_type<tc>, window_params = [{transform_indices = @transform_0, window_bounds = array<i64: 16, 128>}, {transform_indices = @transform_1, window_bounds = array<i64: 128, 128>}, {transform_indices = @transform_2, window_bounds = array<i64: 1, 128>}, {transform_indices = @transform_3, window_bounds = array<i64: 16, 128>}, {transform_indices = @transform_4, window_bounds = array<i64: 16, 128>}]} {
    %c0 = arith.constant 0 : index
    %c0_0 = arith.constant 0 : index
    %0 = vector.load %arg3[%c0, %c0_0] : memref<16x128xbf16, #tpu.memory_space<vmem>>, vector<16x128xbf16>
    %c0_1 = arith.constant 0 : index
    %c0_2 = arith.constant 0 : index
    %1 = vector.load %arg4[%c0_1, %c0_2] : memref<128x128xbf16, #tpu.memory_space<vmem>>, vector<128x128xbf16>
    %cst = arith.constant dense<0.000000e+00> : vector<16x128xf32>
    %2 = tpu.matmul %0, %1, %cst {dimension_numbers = #tpu.dot_dimension_numbers<[1], [0], [0], [1], [0, 0, 1, 1], [], []>} : vector<16x128xbf16>, vector<128x128xbf16>, vector<16x128xf32> -> vector<16x128xf32>
    %c0_3 = arith.constant 0 : index
    %c0_4 = arith.constant 0 : index
    %3 = vector.load %arg5[%c0_3, %c0_4] : memref<1x128xf32, #tpu.memory_space<vmem>>, vector<1x128xf32>
    %4 = vector.broadcast %3 : vector<1x128xf32> to vector<16x128xf32>
    %5 = arith.addf %2, %4 : vector<16x128xf32>
    %c0_5 = arith.constant 0 : index
    %c0_6 = arith.constant 0 : index
    %6 = vector.load %arg6[%c0_5, %c0_6] : memref<16x128xbf16, #tpu.memory_space<vmem>>, vector<16x128xbf16>
    %7 = arith.extf %6 : vector<16x128xbf16> to vector<16x128xf32>
    %8 = arith.addf %5, %7 : vector<16x128xf32>
    %9 = arith.truncf %8 : vector<16x128xf32> to vector<16x128xbf16>
    %c0_7 = arith.constant 0 : index
    %c0_8 = arith.constant 0 : index
    %10 = vector.load %arg7[%c0_7, %c0_8] : memref<16x128xbf16, #tpu.memory_space<vmem>>, vector<16x128xbf16>
    tpu.vector_store %arg7[%c0_7, %c0_8], %9 {strides = array<i32>} : memref<16x128xbf16, #tpu.memory_space<vmem>>, vector<16x128xbf16>,
    return
  }
  func.func @transform_0(%arg0: i32, %arg1: i32, %arg2: i32) -> (i32, i32) {
    %c0_i32 = arith.constant 0 : i32
    return %arg0, %arg2 : i32, i32
  }
  func.func @transform_1(%arg0: i32, %arg1: i32, %arg2: i32) -> (i32, i32) {
    %c0_i32 = arith.constant 0 : i32
    return %arg2, %arg1 : i32, i32
  }
  func.func @transform_2(%arg0: i32, %arg1: i32, %arg2: i32) -> (i32, i32) {
    %c0_i32 = arith.constant 0 : i32
    %c0_i32_0 = arith.constant 0 : i32
    return %c0_i32, %arg1 : i32, i32
  }
  func.func @transform_3(%arg0: i32, %arg1: i32, %arg2: i32) -> (i32, i32) {
    %c0_i32 = arith.constant 0 : i32
    return %arg0, %arg1 : i32, i32
  }
  func.func @transform_4(%arg0: i32, %arg1: i32, %arg2: i32) -> (i32, i32) {
    %c0_i32 = arith.constant 0 : i32
    return %arg0, %arg1 : i32, i32
  }
}

module attributes {stable_mosaic.version = 11 : i64} {
  func.func @kernel(%arg0: i32, %arg1: i32, %arg2: i32, %arg3: memref<16x128xbf16, #tpu.memory_space<vmem>>, %arg4: memref<128x512xbf16, #tpu.memory_space<vmem>>, %arg5: memref<1x128xf32, #tpu.memory_space<vmem>>, %arg6: memref<1x128xf32, #tpu.memory_space<vmem>>, %arg7: memref<1x512xf32, #tpu.memory_space<vmem>>, %arg8: memref<16x512xbf16, #tpu.memory_space<vmem>>) attributes {dimension_semantics = [#tpu.dimension_semantics<parallel>, #tpu.dimension_semantics<parallel>, #tpu.dimension_semantics<arbitrary>], iteration_bounds = array<i64: 1, 1, 1>, scalar_prefetch = 0 : i64, scratch_operands = 0 : i64, tpu.core_type = #tpu.core_type<tc>, window_params = [{transform_indices = @transform_0, window_bounds = array<i64: 16, 128>}, {transform_indices = @transform_1, window_bounds = array<i64: 128, 512>}, {pipeline_mode = #tpu.pipeline_mode<synchronous>, transform_indices = @transform_2, window_bounds = array<i64: 1, 128>}, {pipeline_mode = #tpu.pipeline_mode<synchronous>, transform_indices = @transform_3, window_bounds = array<i64: 1, 128>}, {transform_indices = @transform_4, window_bounds = array<i64: 1, 512>}, {transform_indices = @transform_5, window_bounds = array<i64: 16, 512>}]} {
    %c0 = arith.constant 0 : index
    %c0_0 = arith.constant 0 : index
    %0 = vector.load %arg3[%c0, %c0_0] : memref<16x128xbf16, #tpu.memory_space<vmem>>, vector<16x128xbf16>
    %1 = arith.extf %0 : vector<16x128xbf16> to vector<16x128xf32>
    %cst = arith.constant dense<0.000000e+00> : vector<16xf32>
    %2 = vector.multi_reduction <add>, %1, %cst [1] : vector<16x128xf32> to vector<16xf32>
    %3 = vector.shape_cast %2 : vector<16xf32> to vector<16x1xf32>
    %cst_1 = arith.constant 1.280000e+02 : f32
    %4 = vector.broadcast %cst_1 : f32 to vector<16x1xf32>
    %5 = arith.divf %3, %4 : vector<16x1xf32>
    %6 = vector.broadcast %5 : vector<16x1xf32> to vector<16x128xf32>
    %7 = arith.subf %1, %6 : vector<16x128xf32>
    %8 = arith.mulf %7, %7 : vector<16x128xf32>
    %cst_2 = arith.constant dense<0.000000e+00> : vector<16xf32>
    %9 = vector.multi_reduction <add>, %8, %cst_2 [1] : vector<16x128xf32> to vector<16xf32>
    %10 = vector.shape_cast %9 : vector<16xf32> to vector<16x1xf32>
    %cst_3 = arith.constant 1.280000e+02 : f32
    %11 = vector.broadcast %cst_3 : f32 to vector<16x1xf32>
    %12 = arith.divf %10, %11 : vector<16x1xf32>
    %13 = vector.broadcast %5 : vector<16x1xf32> to vector<16x128xf32>
    %14 = arith.subf %1, %13 : vector<16x128xf32>
    %cst_4 = arith.constant 9.99999974E-6 : f32
    %15 = vector.broadcast %cst_4 : f32 to vector<16x1xf32>
    %16 = arith.addf %12, %15 : vector<16x1xf32>
    %17 = math.rsqrt %16 : vector<16x1xf32>
    %18 = vector.broadcast %17 : vector<16x1xf32> to vector<16x128xf32>
    %19 = arith.mulf %14, %18 : vector<16x128xf32>
    %c0_5 = arith.constant 0 : index
    %c0_6 = arith.constant 0 : index
    %20 = vector.load %arg5[%c0_5, %c0_6] : memref<1x128xf32, #tpu.memory_space<vmem>>, vector<1x128xf32>
    %21 = vector.broadcast %20 : vector<1x128xf32> to vector<16x128xf32>
    %22 = arith.mulf %19, %21 : vector<16x128xf32>
    %c0_7 = arith.constant 0 : index
    %c0_8 = arith.constant 0 : index
    %23 = vector.load %arg6[%c0_7, %c0_8] : memref<1x128xf32, #tpu.memory_space<vmem>>, vector<1x128xf32>
    %24 = vector.broadcast %23 : vector<1x128xf32> to vector<16x128xf32>
    %25 = arith.addf %22, %24 : vector<16x128xf32>
    %26 = arith.truncf %25 : vector<16x128xf32> to vector<16x128xbf16>
    %c0_9 = arith.constant 0 : index
    %c0_10 = arith.constant 0 : index
    %27 = vector.load %arg4[%c0_9, %c0_10] : memref<128x512xbf16, #tpu.memory_space<vmem>>, vector<128x512xbf16>
    %cst_11 = arith.constant dense<0.000000e+00> : vector<16x512xf32>
    %28 = tpu.matmul %26, %27, %cst_11 {dimension_numbers = #tpu.dot_dimension_numbers<[1], [0], [0], [1], [0, 0, 1, 1], [], []>} : vector<16x128xbf16>, vector<128x512xbf16>, vector<16x512xf32> -> vector<16x512xf32>
    %c0_12 = arith.constant 0 : index
    %c0_13 = arith.constant 0 : index
    %29 = vector.load %arg7[%c0_12, %c0_13] : memref<1x512xf32, #tpu.memory_space<vmem>>, vector<1x512xf32>
    %30 = vector.broadcast %29 : vector<1x512xf32> to vector<16x512xf32>
    %31 = arith.addf %28, %30 : vector<16x512xf32>
    %cst_14 = arith.constant 5.000000e-01 : f32
    %32 = vector.broadcast %cst_14 : f32 to vector<16x512xf32>
    %33 = arith.mulf %32, %31 : vector<16x512xf32>
    %cst_15 = arith.constant 4.471500e-02 : f32
    %34 = vector.broadcast %cst_15 : f32 to vector<16x512xf32>
    %35 = arith.mulf %34, %31 : vector<16x512xf32>
    %36 = arith.mulf %35, %31 : vector<16x512xf32>
    %37 = arith.mulf %36, %31 : vector<16x512xf32>
    %38 = arith.addf %31, %37 : vector<16x512xf32>
    %cst_16 = arith.constant 0.797884583 : f32
    %39 = vector.broadcast %cst_16 : f32 to vector<16x512xf32>
    %40 = arith.mulf %39, %38 : vector<16x512xf32>
    %41 = math.tanh %40 : vector<16x512xf32>
    %cst_17 = arith.constant 1.000000e+00 : f32
    %42 = vector.broadcast %cst_17 : f32 to vector<16x512xf32>
    %43 = arith.addf %42, %41 : vector<16x512xf32>
    %44 = arith.mulf %33, %43 : vector<16x512xf32>
    %45 = arith.truncf %44 : vector<16x512xf32> to vector<16x512xbf16>
    %c0_18 = arith.constant 0 : index
    %c0_19 = arith.constant 0 : index
    %46 = vector.load %arg8[%c0_18, %c0_19] : memref<16x512xbf16, #tpu.memory_space<vmem>>, vector<16x512xbf16>
    tpu.vector_store %arg8[%c0_18, %c0_19], %45 {strides = array<i32>} : memref<16x512xbf16, #tpu.memory_space<vmem>>, vector<16x512xbf16>,
    return
  }
  func.func @transform_0(%arg0: i32, %arg1: i32, %arg2: i32) -> (i32, i32) {
    %c0_i32 = arith.constant 0 : i32
    return %arg0, %arg2 : i32, i32
  }
  func.func @transform_1(%arg0: i32, %arg1: i32, %arg2: i32) -> (i32, i32) {
    %c0_i32 = arith.constant 0 : i32
    return %arg2, %arg1 : i32, i32
  }
  func.func @transform_2(%arg0: i32, %arg1: i32, %arg2: i32) -> (i32, i32) {
    %c0_i32 = arith.constant 0 : i32
    %c0_i32_0 = arith.constant 0 : i32
    %c0_i32_1 = arith.constant 0 : i32
    return %c0_i32, %c0_i32_0 : i32, i32
  }
  func.func @transform_3(%arg0: i32, %arg1: i32, %arg2: i32) -> (i32, i32) {
    %c0_i32 = arith.constant 0 : i32
    %c0_i32_0 = arith.constant 0 : i32
    %c0_i32_1 = arith.constant 0 : i32
    return %c0_i32, %c0_i32_0 : i32, i32
  }
  func.func @transform_4(%arg0: i32, %arg1: i32, %arg2: i32) -> (i32, i32) {
    %c0_i32 = arith.constant 0 : i32
    %c0_i32_0 = arith.constant 0 : i32
    return %c0_i32, %arg1 : i32, i32
  }
  func.func @transform_5(%arg0: i32, %arg1: i32, %arg2: i32) -> (i32, i32) {
    %c0_i32 = arith.constant 0 : i32
    return %arg0, %arg1 : i32, i32
  }
}

module attributes {stable_mosaic.version = 11 : i64} {
  func.func @_flash_attn_kernel(%arg0: i32, %arg1: i32, %arg2: i32, %arg3: memref<1x8x128xbf16, #tpu.memory_space<vmem>>, %arg4: memref<1x8x128xbf16, #tpu.memory_space<vmem>>, %arg5: memref<1x8x128xbf16, #tpu.memory_space<vmem>>, %arg6: memref<1x8x128xbf16, #tpu.memory_space<vmem>>, %arg7: memref<4x8x1xf32, #tpu.memory_space<vmem>>, %arg8: memref<4x8x1xf32, #tpu.memory_space<vmem>>, %arg9: memref<4x8x32xf32, #tpu.memory_space<vmem>>) attributes {dimension_semantics = [#tpu.dimension_semantics<parallel>, #tpu.dimension_semantics<parallel>, #tpu.dimension_semantics<arbitrary>], iteration_bounds = array<i64: 2, 1, 1>, scalar_prefetch = 0 : i64, scratch_operands = 3 : i64, tpu.core_type = #tpu.core_type<tc>, window_params = [{transform_indices = @transform_0, window_bounds = array<i64: 1, 8, 128>}, {transform_indices = @transform_1, window_bounds = array<i64: 1, 8, 128>}, {transform_indices = @transform_2, window_bounds = array<i64: 1, 8, 128>}, {transform_indices = @transform_3, window_bounds = array<i64: 1, 8, 128>}]} {
    %c0_i32 = arith.constant 0 : i32
    %0 = arith.cmpi eq, %arg2, %c0_i32 : i32
    %1 = arith.extui %0 : i1 to i32
    %c0_i32_0 = arith.constant 0 : i32
    %2 = arith.cmpi ne, %1, %c0_i32_0 : i32
    scf.if %2 {
      %cst = arith.constant 0xFF800000 : f32
      %9 = vector.broadcast %cst : f32 to vector<4x8x1xf32>
      %c0 = arith.constant 0 : index
      %c0_4 = arith.constant 0 : index
      %c0_5 = arith.constant 0 : index
      %10 = vector.load %arg7[%c0, %c0_4, %c0_5] : memref<4x8x1xf32, #tpu.memory_space<vmem>>, vector<4x8x1xf32>
      tpu.vector_store %arg7[%c0, %c0_4, %c0_5], %9 {strides = array<i32>} : memref<4x8x1xf32, #tpu.memory_space<vmem>>, vector<4x8x1xf32>,
      %cst_6 = arith.constant 0.000000e+00 : f32
      %11 = vector.broadcast %cst_6 : f32 to vector<4x8x1xf32>
      %c0_7 = arith.constant 0 : index
      %c0_8 = arith.constant 0 : index
      %c0_9 = arith.constant 0 : index
      %12 = vector.load %arg8[%c0_7, %c0_8, %c0_9] : memref<4x8x1xf32, #tpu.memory_space<vmem>>, vector<4x8x1xf32>
      tpu.vector_store %arg8[%c0_7, %c0_8, %c0_9], %11 {strides = array<i32>} : memref<4x8x1xf32, #tpu.memory_space<vmem>>, vector<4x8x1xf32>,
      %cst_10 = arith.constant 0.000000e+00 : f32
      %13 = vector.broadcast %cst_10 : f32 to vector<4x8x32xf32>
      %c0_11 = arith.constant 0 : index
      %c0_12 = arith.constant 0 : index
      %c0_13 = arith.constant 0 : index
      %14 = vector.load %arg9[%c0_11, %c0_12, %c0_13] : memref<4x8x32xf32, #tpu.memory_space<vmem>>, vector<4x8x32xf32>
      tpu.vector_store %arg9[%c0_11, %c0_12, %c0_13], %13 {strides = array<i32>} : memref<4x8x32xf32, #tpu.memory_space<vmem>>, vector<4x8x32xf32>,
    } else {
    }
    %3 = arith.cmpi sle, %arg2, %arg1 : i32
    %4 = arith.extui %3 : i1 to i32
    %c0_i32_1 = arith.constant 0 : i32
    %5 = arith.cmpi ne, %4, %c0_i32_1 : i32
    scf.if %5 {
      %c8_i32 = arith.constant 8 : i32
      %9 = arith.muli %arg1, %c8_i32 : i32
      %10 = tpu.iota {dimensions = array<i32: 0>} : vector<8x8xi32>
      %11 = vector.broadcast %9 : i32 to vector<8x8xi32>
      %12 = arith.addi %11, %10 : vector<8x8xi32>
      %c8_i32_4 = arith.constant 8 : i32
      %13 = arith.muli %arg2, %c8_i32_4 : i32
      %14 = tpu.iota {dimensions = array<i32: 1>} : vector<8x8xi32>
      %15 = vector.broadcast %13 : i32 to vector<8x8xi32>
      %16 = arith.addi %15, %14 : vector<8x8xi32>
      %17 = arith.cmpi sgt, %16, %12 : vector<8x8xi32>
      %c0 = arith.constant 0 : index
      %c0_5 = arith.constant 0 : index
      %c0_6 = arith.constant 0 : index
      %18 = vector.load %arg3[%c0, %c0_5, %c0_6] : memref<1x8x128xbf16, #tpu.memory_space<vmem>>, vector<1x8x128xbf16>
      %19 = vector.shape_cast %18 : vector<1x8x128xbf16> to vector<8x128xbf16>
      %c0_7 = arith.constant 0 : index
      %c0_8 = arith.constant 0 : index
      %c0_9 = arith.constant 0 : index
      %20 = vector.load %arg4[%c0_7, %c0_8, %c0_9] : memref<1x8x128xbf16, #tpu.memory_space<vmem>>, vector<1x8x128xbf16>
      %21 = vector.shape_cast %20 : vector<1x8x128xbf16> to vector<8x128xbf16>
      %c0_10 = arith.constant 0 : index
      %c0_11 = arith.constant 0 : index
      %c0_12 = arith.constant 0 : index
      %22 = vector.load %arg5[%c0_10, %c0_11, %c0_12] : memref<1x8x128xbf16, #tpu.memory_space<vmem>>, vector<1x8x128xbf16>
      %23 = vector.shape_cast %22 : vector<1x8x128xbf16> to vector<8x128xbf16>
      %24 = vector.extract_strided_slice %19 {offsets = [0, 0], sizes = [8, 32], strides = [1, 1]} : vector<8x128xbf16> to vector<8x32xbf16>
      %25 = vector.extract_strided_slice %21 {offsets = [0, 0], sizes = [8, 32], strides = [1, 1]} : vector<8x128xbf16> to vector<8x32xbf16>
      %cst = arith.constant dense<0.000000e+00> : vector<8x8xf32>
      %26 = tpu.matmul %24, %25, %cst {dimension_numbers = #tpu.dot_dimension_numbers<[1], [1], [0], [0], [0, 0, 1, 0], [], []>} : vector<8x32xbf16>, vector<8x32xbf16>, vector<8x8xf32> -> vector<8x8xf32>
      %cst_13 = arith.constant 0.176776692 : f32
      %27 = vector.broadcast %cst_13 : f32 to vector<8x8xf32>
      %28 = arith.mulf %26, %27 : vector<8x8xf32>
      %cst_14 = arith.constant 0xFF800000 : f32
      %29 = vector.broadcast %cst_14 : f32 to vector<8x8xf32>
      %30 = arith.select %17, %29, %28 : vector<8x8xi1>, vector<8x8xf32>
      %c0_15 = arith.constant 0 : index
      %c0_16 = arith.constant 0 : index
      %c0_17 = arith.constant 0 : index
      %31 = vector.load %arg7[%c0_15, %c0_16, %c0_17] : memref<4x8x1xf32, #tpu.memory_space<vmem>>, vector<1x8x1xf32>
      %32 = vector.shape_cast %31 : vector<1x8x1xf32> to vector<8x1xf32>
      %cst_18 = arith.constant dense<0xFF800000> : vector<8xf32>
      %33 = vector.multi_reduction <maximumf>, %30, %cst_18 [1] : vector<8x8xf32> to vector<8xf32>
      %34 = vector.shape_cast %33 : vector<8xf32> to vector<8x1xf32>
      %35 = arith.maximumf %32, %34 : vector<8x1xf32>
      %36 = arith.subf %32, %35 : vector<8x1xf32>
      %37 = math.exp %36 : vector<8x1xf32>
      %38 = vector.broadcast %35 : vector<8x1xf32> to vector<8x8xf32>
      %39 = arith.subf %30, %38 : vector<8x8xf32>
      %40 = math.exp %39 : vector<8x8xf32>
      %c0_19 = arith.constant 0 : index
      %c0_20 = arith.constant 0 : index
      %c0_21 = arith.constant 0 : index
      %41 = vector.load %arg8[%c0_19, %c0_20, %c0_21] : memref<4x8x1xf32, #tpu.memory_space<vmem>>, vector<1x8x1xf32>
      %42 = vector.shape_cast %41 : vector<1x8x1xf32> to vector<8x1xf32>
      %43 = arith.mulf %37, %42 : vector<8x1xf32>
      %cst_22 = arith.constant dense<0.000000e+00> : vector<8xf32>
      %44 = vector.multi_reduction <add>, %40, %cst_22 [1] : vector<8x8xf32> to vector<8xf32>
      %45 = vector.shape_cast %44 : vector<8xf32> to vector<8x1xf32>
      %46 = arith.addf %43, %45 : vector<8x1xf32>
      %c0_23 = arith.constant 0 : index
      %c0_24 = arith.constant 0 : index
      %c0_25 = arith.constant 0 : index
      %47 = vector.load %arg8[%c0_23, %c0_24, %c0_25] : memref<4x8x1xf32, #tpu.memory_space<vmem>>, vector<1x8x1xf32>
      %48 = vector.shape_cast %47 : vector<1x8x1xf32> to vector<8x1xf32>
      %49 = vector.shape_cast %46 : vector<8x1xf32> to vector<1x8x1xf32>
      tpu.vector_store %arg8[%c0_23, %c0_24, %c0_25], %49 {strides = array<i32>} : memref<4x8x1xf32, #tpu.memory_space<vmem>>, vector<1x8x1xf32>,
      %c0_26 = arith.constant 0 : index
      %c0_27 = arith.constant 0 : index
      %c0_28 = arith.constant 0 : index
      %50 = vector.load %arg9[%c0_26, %c0_27, %c0_28] : memref<4x8x32xf32, #tpu.memory_space<vmem>>, vector<1x8x32xf32>
      %51 = vector.shape_cast %50 : vector<1x8x32xf32> to vector<8x32xf32>
      %52 = vector.broadcast %37 : vector<8x1xf32> to vector<8x32xf32>
      %53 = arith.mulf %52, %51 : vector<8x32xf32>
      %54 = arith.truncf %40 : vector<8x8xf32> to vector<8x8xbf16>
      %55 = vector.extract_strided_slice %23 {offsets = [0, 0], sizes = [8, 32], strides = [1, 1]} : vector<8x128xbf16> to vector<8x32xbf16>
      %cst_29 = arith.constant dense<0.000000e+00> : vector<8x32xf32>
      %56 = tpu.matmul %54, %55, %cst_29 {dimension_numbers = #tpu.dot_dimension_numbers<[1], [0], [0], [1], [0, 0, 1, 1], [], []>} : vector<8x8xbf16>, vector<8x32xbf16>, vector<8x32xf32> -> vector<8x32xf32>
      %57 = arith.addf %53, %56 : vector<8x32xf32>
      %c0_30 = arith.constant 0 : index
      %c0_31 = arith.constant 0 : index
      %c0_32 = arith.constant 0 : index
      %58 = vector.load %arg9[%c0_30, %c0_31, %c0_32] : memref<4x8x32xf32, #tpu.memory_space<vmem>>, vector<1x8x32xf32>
      %59 = vector.shape_cast %58 : vector<1x8x32xf32> to vector<8x32xf32>
      %60 = vector.shape_cast %57 : vector<8x32xf32> to vector<1x8x32xf32>
      tpu.vector_store %arg9[%c0_30, %c0_31, %c0_32], %60 {strides = array<i32>} : memref<4x8x32xf32, #tpu.memory_space<vmem>>, vector<1x8x32xf32>,
      %c0_33 = arith.constant 0 : index
      %c0_34 = arith.constant 0 : index
      %c0_35 = arith.constant 0 : index
      %61 = vector.load %arg7[%c0_33, %c0_34, %c0_35] : memref<4x8x1xf32, #tpu.memory_space<vmem>>, vector<1x8x1xf32>
      %62 = vector.shape_cast %61 : vector<1x8x1xf32> to vector<8x1xf32>
      %63 = vector.shape_cast %35 : vector<8x1xf32> to vector<1x8x1xf32>
      tpu.vector_store %arg7[%c0_33, %c0_34, %c0_35], %63 {strides = array<i32>} : memref<4x8x1xf32, #tpu.memory_space<vmem>>, vector<1x8x1xf32>,
      %64 = vector.extract_strided_slice %19 {offsets = [0, 32], sizes = [8, 32], strides = [1, 1]} : vector<8x128xbf16> to vector<8x32xbf16>
      %65 = vector.extract_strided_slice %21 {offsets = [0, 32], sizes = [8, 32], strides = [1, 1]} : vector<8x128xbf16> to vector<8x32xbf16>
      %cst_36 = arith.constant dense<0.000000e+00> : vector<8x8xf32>
      %66 = tpu.matmul %64, %65, %cst_36 {dimension_numbers = #tpu.dot_dimension_numbers<[1], [1], [0], [0], [0, 0, 1, 0], [], []>} : vector<8x32xbf16>, vector<8x32xbf16>, vector<8x8xf32> -> vector<8x8xf32>
      %cst_37 = arith.constant 0.176776692 : f32
      %67 = vector.broadcast %cst_37 : f32 to vector<8x8xf32>
      %68 = arith.mulf %66, %67 : vector<8x8xf32>
      %cst_38 = arith.constant 0xFF800000 : f32
      %69 = vector.broadcast %cst_38 : f32 to vector<8x8xf32>
      %70 = arith.select %17, %69, %68 : vector<8x8xi1>, vector<8x8xf32>
      %c1 = arith.constant 1 : index
      %c0_39 = arith.constant 0 : index
      %c0_40 = arith.constant 0 : index
      %71 = vector.load %arg7[%c1, %c0_39, %c0_40] : memref<4x8x1xf32, #tpu.memory_space<vmem>>, vector<1x8x1xf32>
      %72 = vector.shape_cast %71 : vector<1x8x1xf32> to vector<8x1xf32>
      %cst_41 = arith.constant dense<0xFF800000> : vector<8xf32>
      %73 = vector.multi_reduction <maximumf>, %70, %cst_41 [1] : vector<8x8xf32> to vector<8xf32>
      %74 = vector.shape_cast %73 : vector<8xf32> to vector<8x1xf32>
      %75 = arith.maximumf %72, %74 : vector<8x1xf32>
      %76 = arith.subf %72, %75 : vector<8x1xf32>
      %77 = math.exp %76 : vector<8x1xf32>
      %78 = vector.broadcast %75 : vector<8x1xf32> to vector<8x8xf32>
      %79 = arith.subf %70, %78 : vector<8x8xf32>
      %80 = math.exp %79 : vector<8x8xf32>
      %c1_42 = arith.constant 1 : index
      %c0_43 = arith.constant 0 : index
      %c0_44 = arith.constant 0 : index
      %81 = vector.load %arg8[%c1_42, %c0_43, %c0_44] : memref<4x8x1xf32, #tpu.memory_space<vmem>>, vector<1x8x1xf32>
      %82 = vector.shape_cast %81 : vector<1x8x1xf32> to vector<8x1xf32>
      %83 = arith.mulf %77, %82 : vector<8x1xf32>
      %cst_45 = arith.constant dense<0.000000e+00> : vector<8xf32>
      %84 = vector.multi_reduction <add>, %80, %cst_45 [1] : vector<8x8xf32> to vector<8xf32>
      %85 = vector.shape_cast %84 : vector<8xf32> to vector<8x1xf32>
      %86 = arith.addf %83, %85 : vector<8x1xf32>
      %c1_46 = arith.constant 1 : index
      %c0_47 = arith.constant 0 : index
      %c0_48 = arith.constant 0 : index
      %87 = vector.load %arg8[%c1_46, %c0_47, %c0_48] : memref<4x8x1xf32, #tpu.memory_space<vmem>>, vector<1x8x1xf32>
      %88 = vector.shape_cast %87 : vector<1x8x1xf32> to vector<8x1xf32>
      %89 = vector.shape_cast %86 : vector<8x1xf32> to vector<1x8x1xf32>
      tpu.vector_store %arg8[%c1_46, %c0_47, %c0_48], %89 {strides = array<i32>} : memref<4x8x1xf32, #tpu.memory_space<vmem>>, vector<1x8x1xf32>,
      %c1_49 = arith.constant 1 : index
      %c0_50 = arith.constant 0 : index
      %c0_51 = arith.constant 0 : index
      %90 = vector.load %arg9[%c1_49, %c0_50, %c0_51] : memref<4x8x32xf32, #tpu.memory_space<vmem>>, vector<1x8x32xf32>
      %91 = vector.shape_cast %90 : vector<1x8x32xf32> to vector<8x32xf32>
      %92 = vector.broadcast %77 : vector<8x1xf32> to vector<8x32xf32>
      %93 = arith.mulf %92, %91 : vector<8x32xf32>
      %94 = arith.truncf %80 : vector<8x8xf32> to vector<8x8xbf16>
      %95 = vector.extract_strided_slice %23 {offsets = [0, 32], sizes = [8, 32], strides = [1, 1]} : vector<8x128xbf16> to vector<8x32xbf16>
      %cst_52 = arith.constant dense<0.000000e+00> : vector<8x32xf32>
      %96 = tpu.matmul %94, %95, %cst_52 {dimension_numbers = #tpu.dot_dimension_numbers<[1], [0], [0], [1], [0, 0, 1, 1], [], []>} : vector<8x8xbf16>, vector<8x32xbf16>, vector<8x32xf32> -> vector<8x32xf32>
      %97 = arith.addf %93, %96 : vector<8x32xf32>
      %c1_53 = arith.constant 1 : index
      %c0_54 = arith.constant 0 : index
      %c0_55 = arith.constant 0 : index
      %98 = vector.load %arg9[%c1_53, %c0_54, %c0_55] : memref<4x8x32xf32, #tpu.memory_space<vmem>>, vector<1x8x32xf32>
      %99 = vector.shape_cast %98 : vector<1x8x32xf32> to vector<8x32xf32>
      %100 = vector.shape_cast %97 : vector<8x32xf32> to vector<1x8x32xf32>
      tpu.vector_store %arg9[%c1_53, %c0_54, %c0_55], %100 {strides = array<i32>} : memref<4x8x32xf32, #tpu.memory_space<vmem>>, vector<1x8x32xf32>,
      %c1_56 = arith.constant 1 : index
      %c0_57 = arith.constant 0 : index
      %c0_58 = arith.constant 0 : index
      %101 = vector.load %arg7[%c1_56, %c0_57, %c0_58] : memref<4x8x1xf32, #tpu.memory_space<vmem>>, vector<1x8x1xf32>
      %102 = vector.shape_cast %101 : vector<1x8x1xf32> to vector<8x1xf32>
      %103 = vector.shape_cast %75 : vector<8x1xf32> to vector<1x8x1xf32>
      tpu.vector_store %arg7[%c1_56, %c0_57, %c0_58], %103 {strides = array<i32>} : memref<4x8x1xf32, #tpu.memory_space<vmem>>, vector<1x8x1xf32>,
      %104 = vector.extract_strided_slice %19 {offsets = [0, 64], sizes = [8, 32], strides = [1, 1]} : vector<8x128xbf16> to vector<8x32xbf16>
      %105 = vector.extract_strided_slice %21 {offsets = [0, 64], sizes = [8, 32], strides = [1, 1]} : vector<8x128xbf16> to vector<8x32xbf16>
      %cst_59 = arith.constant dense<0.000000e+00> : vector<8x8xf32>
      %106 = tpu.matmul %104, %105, %cst_59 {dimension_numbers = #tpu.dot_dimension_numbers<[1], [1], [0], [0], [0, 0, 1, 0], [], []>} : vector<8x32xbf16>, vector<8x32xbf16>, vector<8x8xf32> -> vector<8x8xf32>
      %cst_60 = arith.constant 0.176776692 : f32
      %107 = vector.broadcast %cst_60 : f32 to vector<8x8xf32>
      %108 = arith.mulf %106, %107 : vector<8x8xf32>
      %cst_61 = arith.constant 0xFF800000 : f32
      %109 = vector.broadcast %cst_61 : f32 to vector<8x8xf32>
      %110 = arith.select %17, %109, %108 : vector<8x8xi1>, vector<8x8xf32>
      %c2 = arith.constant 2 : index
      %c0_62 = arith.constant 0 : index
      %c0_63 = arith.constant 0 : index
      %111 = vector.load %arg7[%c2, %c0_62, %c0_63] : memref<4x8x1xf32, #tpu.memory_space<vmem>>, vector<1x8x1xf32>
      %112 = vector.shape_cast %111 : vector<1x8x1xf32> to vector<8x1xf32>
      %cst_64 = arith.constant dense<0xFF800000> : vector<8xf32>
      %113 = vector.multi_reduction <maximumf>, %110, %cst_64 [1] : vector<8x8xf32> to vector<8xf32>
      %114 = vector.shape_cast %113 : vector<8xf32> to vector<8x1xf32>
      %115 = arith.maximumf %112, %114 : vector<8x1xf32>
      %116 = arith.subf %112, %115 : vector<8x1xf32>
      %117 = math.exp %116 : vector<8x1xf32>
      %118 = vector.broadcast %115 : vector<8x1xf32> to vector<8x8xf32>
      %119 = arith.subf %110, %118 : vector<8x8xf32>
      %120 = math.exp %119 : vector<8x8xf32>
      %c2_65 = arith.constant 2 : index
      %c0_66 = arith.constant 0 : index
      %c0_67 = arith.constant 0 : index
      %121 = vector.load %arg8[%c2_65, %c0_66, %c0_67] : memref<4x8x1xf32, #tpu.memory_space<vmem>>, vector<1x8x1xf32>
      %122 = vector.shape_cast %121 : vector<1x8x1xf32> to vector<8x1xf32>
      %123 = arith.mulf %117, %122 : vector<8x1xf32>
      %cst_68 = arith.constant dense<0.000000e+00> : vector<8xf32>
      %124 = vector.multi_reduction <add>, %120, %cst_68 [1] : vector<8x8xf32> to vector<8xf32>
      %125 = vector.shape_cast %124 : vector<8xf32> to vector<8x1xf32>
      %126 = arith.addf %123, %125 : vector<8x1xf32>
      %c2_69 = arith.constant 2 : index
      %c0_70 = arith.constant 0 : index
      %c0_71 = arith.constant 0 : index
      %127 = vector.load %arg8[%c2_69, %c0_70, %c0_71] : memref<4x8x1xf32, #tpu.memory_space<vmem>>, vector<1x8x1xf32>
      %128 = vector.shape_cast %127 : vector<1x8x1xf32> to vector<8x1xf32>
      %129 = vector.shape_cast %126 : vector<8x1xf32> to vector<1x8x1xf32>
      tpu.vector_store %arg8[%c2_69, %c0_70, %c0_71], %129 {strides = array<i32>} : memref<4x8x1xf32, #tpu.memory_space<vmem>>, vector<1x8x1xf32>,
      %c2_72 = arith.constant 2 : index
      %c0_73 = arith.constant 0 : index
      %c0_74 = arith.constant 0 : index
      %130 = vector.load %arg9[%c2_72, %c0_73, %c0_74] : memref<4x8x32xf32, #tpu.memory_space<vmem>>, vector<1x8x32xf32>
      %131 = vector.shape_cast %130 : vector<1x8x32xf32> to vector<8x32xf32>
      %132 = vector.broadcast %117 : vector<8x1xf32> to vector<8x32xf32>
      %133 = arith.mulf %132, %131 : vector<8x32xf32>
      %134 = arith.truncf %120 : vector<8x8xf32> to vector<8x8xbf16>
      %135 = vector.extract_strided_slice %23 {offsets = [0, 64], sizes = [8, 32], strides = [1, 1]} : vector<8x128xbf16> to vector<8x32xbf16>
      %cst_75 = arith.constant dense<0.000000e+00> : vector<8x32xf32>
      %136 = tpu.matmul %134, %135, %cst_75 {dimension_numbers = #tpu.dot_dimension_numbers<[1], [0], [0], [1], [0, 0, 1, 1], [], []>} : vector<8x8xbf16>, vector<8x32xbf16>, vector<8x32xf32> -> vector<8x32xf32>
      %137 = arith.addf %133, %136 : vector<8x32xf32>
      %c2_76 = arith.constant 2 : index
      %c0_77 = arith.constant 0 : index
      %c0_78 = arith.constant 0 : index
      %138 = vector.load %arg9[%c2_76, %c0_77, %c0_78] : memref<4x8x32xf32, #tpu.memory_space<vmem>>, vector<1x8x32xf32>
      %139 = vector.shape_cast %138 : vector<1x8x32xf32> to vector<8x32xf32>
      %140 = vector.shape_cast %137 : vector<8x32xf32> to vector<1x8x32xf32>
      tpu.vector_store %arg9[%c2_76, %c0_77, %c0_78], %140 {strides = array<i32>} : memref<4x8x32xf32, #tpu.memory_space<vmem>>, vector<1x8x32xf32>,
      %c2_79 = arith.constant 2 : index
      %c0_80 = arith.constant 0 : index
      %c0_81 = arith.constant 0 : index
      %141 = vector.load %arg7[%c2_79, %c0_80, %c0_81] : memref<4x8x1xf32, #tpu.memory_space<vmem>>, vector<1x8x1xf32>
      %142 = vector.shape_cast %141 : vector<1x8x1xf32> to vector<8x1xf32>
      %143 = vector.shape_cast %115 : vector<8x1xf32> to vector<1x8x1xf32>
      tpu.vector_store %arg7[%c2_79, %c0_80, %c0_81], %143 {strides = array<i32>} : memref<4x8x1xf32, #tpu.memory_space<vmem>>, vector<1x8x1xf32>,
      %144 = vector.extract_strided_slice %19 {offsets = [0, 96], sizes = [8, 32], strides = [1, 1]} : vector<8x128xbf16> to vector<8x32xbf16>
      %145 = vector.extract_strided_slice %21 {offsets = [0, 96], sizes = [8, 32], strides = [1, 1]} : vector<8x128xbf16> to vector<8x32xbf16>
      %cst_82 = arith.constant dense<0.000000e+00> : vector<8x8xf32>
      %146 = tpu.matmul %144, %145, %cst_82 {dimension_numbers = #tpu.dot_dimension_numbers<[1], [1], [0], [0], [0, 0, 1, 0], [], []>} : vector<8x32xbf16>, vector<8x32xbf16>, vector<8x8xf32> -> vector<8x8xf32>
      %cst_83 = arith.constant 0.176776692 : f32
      %147 = vector.broadcast %cst_83 : f32 to vector<8x8xf32>
      %148 = arith.mulf %146, %147 : vector<8x8xf32>
      %cst_84 = arith.constant 0xFF800000 : f32
      %149 = vector.broadcast %cst_84 : f32 to vector<8x8xf32>
      %150 = arith.select %17, %149, %148 : vector<8x8xi1>, vector<8x8xf32>
      %c3 = arith.constant 3 : index
      %c0_85 = arith.constant 0 : index
      %c0_86 = arith.constant 0 : index
      %151 = vector.load %arg7[%c3, %c0_85, %c0_86] : memref<4x8x1xf32, #tpu.memory_space<vmem>>, vector<1x8x1xf32>
      %152 = vector.shape_cast %151 : vector<1x8x1xf32> to vector<8x1xf32>
      %cst_87 = arith.constant dense<0xFF800000> : vector<8xf32>
      %153 = vector.multi_reduction <maximumf>, %150, %cst_87 [1] : vector<8x8xf32> to vector<8xf32>
      %154 = vector.shape_cast %153 : vector<8xf32> to vector<8x1xf32>
      %155 = arith.maximumf %152, %154 : vector<8x1xf32>
      %156 = arith.subf %152, %155 : vector<8x1xf32>
      %157 = math.exp %156 : vector<8x1xf32>
      %158 = vector.broadcast %155 : vector<8x1xf32> to vector<8x8xf32>
      %159 = arith.subf %150, %158 : vector<8x8xf32>
      %160 = math.exp %159 : vector<8x8xf32>
      %c3_88 = arith.constant 3 : index
      %c0_89 = arith.constant 0 : index
      %c0_90 = arith.constant 0 : index
      %161 = vector.load %arg8[%c3_88, %c0_89, %c0_90] : memref<4x8x1xf32, #tpu.memory_space<vmem>>, vector<1x8x1xf32>
      %162 = vector.shape_cast %161 : vector<1x8x1xf32> to vector<8x1xf32>
      %163 = arith.mulf %157, %162 : vector<8x1xf32>
      %cst_91 = arith.constant dense<0.000000e+00> : vector<8xf32>
      %164 = vector.multi_reduction <add>, %160, %cst_91 [1] : vector<8x8xf32> to vector<8xf32>
      %165 = vector.shape_cast %164 : vector<8xf32> to vector<8x1xf32>
      %166 = arith.addf %163, %165 : vector<8x1xf32>
      %c3_92 = arith.constant 3 : index
      %c0_93 = arith.constant 0 : index
      %c0_94 = arith.constant 0 : index
      %167 = vector.load %arg8[%c3_92, %c0_93, %c0_94] : memref<4x8x1xf32, #tpu.memory_space<vmem>>, vector<1x8x1xf32>
      %168 = vector.shape_cast %167 : vector<1x8x1xf32> to vector<8x1xf32>
      %169 = vector.shape_cast %166 : vector<8x1xf32> to vector<1x8x1xf32>
      tpu.vector_store %arg8[%c3_92, %c0_93, %c0_94], %169 {strides = array<i32>} : memref<4x8x1xf32, #tpu.memory_space<vmem>>, vector<1x8x1xf32>,
      %c3_95 = arith.constant 3 : index
      %c0_96 = arith.constant 0 : index
      %c0_97 = arith.constant 0 : index
      %170 = vector.load %arg9[%c3_95, %c0_96, %c0_97] : memref<4x8x32xf32, #tpu.memory_space<vmem>>, vector<1x8x32xf32>
      %171 = vector.shape_cast %170 : vector<1x8x32xf32> to vector<8x32xf32>
      %172 = vector.broadcast %157 : vector<8x1xf32> to vector<8x32xf32>
      %173 = arith.mulf %172, %171 : vector<8x32xf32>
      %174 = arith.truncf %160 : vector<8x8xf32> to vector<8x8xbf16>
      %175 = vector.extract_strided_slice %23 {offsets = [0, 96], sizes = [8, 32], strides = [1, 1]} : vector<8x128xbf16> to vector<8x32xbf16>
      %cst_98 = arith.constant dense<0.000000e+00> : vector<8x32xf32>
      %176 = tpu.matmul %174, %175, %cst_98 {dimension_numbers = #tpu.dot_dimension_numbers<[1], [0], [0], [1], [0, 0, 1, 1], [], []>} : vector<8x8xbf16>, vector<8x32xbf16>, vector<8x32xf32> -> vector<8x32xf32>
      %177 = arith.addf %173, %176 : vector<8x32xf32>
      %c3_99 = arith.constant 3 : index
      %c0_100 = arith.constant 0 : index
      %c0_101 = arith.constant 0 : index
      %178 = vector.load %arg9[%c3_99, %c0_100, %c0_101] : memref<4x8x32xf32, #tpu.memory_space<vmem>>, vector<1x8x32xf32>
      %179 = vector.shape_cast %178 : vector<1x8x32xf32> to vector<8x32xf32>
      %180 = vector.shape_cast %177 : vector<8x32xf32> to vector<1x8x32xf32>
      tpu.vector_store %arg9[%c3_99, %c0_100, %c0_101], %180 {strides = array<i32>} : memref<4x8x32xf32, #tpu.memory_space<vmem>>, vector<1x8x32xf32>,
      %c3_102 = arith.constant 3 : index
      %c0_103 = arith.constant 0 : index
      %c0_104 = arith.constant 0 : index
      %181 = vector.load %arg7[%c3_102, %c0_103, %c0_104] : memref<4x8x1xf32, #tpu.memory_space<vmem>>, vector<1x8x1xf32>
      %182 = vector.shape_cast %181 : vector<1x8x1xf32> to vector<8x1xf32>
      %183 = vector.shape_cast %155 : vector<8x1xf32> to vector<1x8x1xf32>
      tpu.vector_store %arg7[%c3_102, %c0_103, %c0_104], %183 {strides = array<i32>} : memref<4x8x1xf32, #tpu.memory_space<vmem>>, vector<1x8x1xf32>,
    } else {
    }
    %c0_i32_2 = arith.constant 0 : i32
    %6 = arith.cmpi eq, %arg2, %c0_i32_2 : i32
    %7 = arith.extui %6 : i1 to i32
    %c0_i32_3 = arith.constant 0 : i32
    %8 = arith.cmpi ne, %7, %c0_i32_3 : i32
    scf.if %8 {
      %c0 = arith.constant 0 : index
      %c0_4 = arith.constant 0 : index
      %c0_5 = arith.constant 0 : index
      %9 = vector.load %arg8[%c0, %c0_4, %c0_5] : memref<4x8x1xf32, #tpu.memory_space<vmem>>, vector<1x8x1xf32>
      %10 = vector.shape_cast %9 : vector<1x8x1xf32> to vector<8x1xf32>
      %11 = tpu.reciprocal %10 {approx = true} : vector<8x1xf32> -> vector<8x1xf32>
      %c0_6 = arith.constant 0 : index
      %c0_7 = arith.constant 0 : index
      %c0_8 = arith.constant 0 : index
      %12 = vector.load %arg9[%c0_6, %c0_7, %c0_8] : memref<4x8x32xf32, #tpu.memory_space<vmem>>, vector<1x8x32xf32>
      %13 = vector.shape_cast %12 : vector<1x8x32xf32> to vector<8x32xf32>
      %14 = vector.broadcast %11 : vector<8x1xf32> to vector<8x32xf32>
      %15 = arith.mulf %13, %14 : vector<8x32xf32>
      %16 = arith.truncf %15 : vector<8x32xf32> to vector<8x32xbf16>
      %c0_9 = arith.constant 0 : index
      %c0_10 = arith.constant 0 : index
      %c0_11 = arith.constant 0 : index
      %17 = vector.load %arg6[%c0_9, %c0_10, %c0_11] : memref<1x8x128xbf16, #tpu.memory_space<vmem>>, vector<1x8x32xbf16>
      %18 = vector.shape_cast %17 : vector<1x8x32xbf16> to vector<8x32xbf16>
      %19 = vector.shape_cast %16 : vector<8x32xbf16> to vector<1x8x32xbf16>
      tpu.vector_store %arg6[%c0_9, %c0_10, %c0_11], %19 {strides = array<i32>} : memref<1x8x128xbf16, #tpu.memory_space<vmem>>, vector<1x8x32xbf16>,
      %c1 = arith.constant 1 : index
      %c0_12 = arith.constant 0 : index
      %c0_13 = arith.constant 0 : index
      %20 = vector.load %arg8[%c1, %c0_12, %c0_13] : memref<4x8x1xf32, #tpu.memory_space<vmem>>, vector<1x8x1xf32>
      %21 = vector.shape_cast %20 : vector<1x8x1xf32> to vector<8x1xf32>
      %22 = tpu.reciprocal %21 {approx = true} : vector<8x1xf32> -> vector<8x1xf32>
      %c1_14 = arith.constant 1 : index
      %c0_15 = arith.constant 0 : index
      %c0_16 = arith.constant 0 : index
      %23 = vector.load %arg9[%c1_14, %c0_15, %c0_16] : memref<4x8x32xf32, #tpu.memory_space<vmem>>, vector<1x8x32xf32>
      %24 = vector.shape_cast %23 : vector<1x8x32xf32> to vector<8x32xf32>
      %25 = vector.broadcast %22 : vector<8x1xf32> to vector<8x32xf32>
      %26 = arith.mulf %24, %25 : vector<8x32xf32>
      %27 = arith.truncf %26 : vector<8x32xf32> to vector<8x32xbf16>
      %c0_17 = arith.constant 0 : index
      %c0_18 = arith.constant 0 : index
      %c32 = arith.constant 32 : index
      %28 = vector.load %arg6[%c0_17, %c0_18, %c32] : memref<1x8x128xbf16, #tpu.memory_space<vmem>>, vector<1x8x32xbf16>
      %29 = vector.shape_cast %28 : vector<1x8x32xbf16> to vector<8x32xbf16>
      %30 = vector.shape_cast %27 : vector<8x32xbf16> to vector<1x8x32xbf16>
      tpu.vector_store %arg6[%c0_17, %c0_18, %c32], %30 {strides = array<i32>} : memref<1x8x128xbf16, #tpu.memory_space<vmem>>, vector<1x8x32xbf16>,
      %c2 = arith.constant 2 : index
      %c0_19 = arith.constant 0 : index
      %c0_20 = arith.constant 0 : index
      %31 = vector.load %arg8[%c2, %c0_19, %c0_20] : memref<4x8x1xf32, #tpu.memory_space<vmem>>, vector<1x8x1xf32>
      %32 = vector.shape_cast %31 : vector<1x8x1xf32> to vector<8x1xf32>
      %33 = tpu.reciprocal %32 {approx = true} : vector<8x1xf32> -> vector<8x1xf32>
      %c2_21 = arith.constant 2 : index
      %c0_22 = arith.constant 0 : index
      %c0_23 = arith.constant 0 : index
      %34 = vector.load %arg9[%c2_21, %c0_22, %c0_23] : memref<4x8x32xf32, #tpu.memory_space<vmem>>, vector<1x8x32xf32>
      %35 = vector.shape_cast %34 : vector<1x8x32xf32> to vector<8x32xf32>
      %36 = vector.broadcast %33 : vector<8x1xf32> to vector<8x32xf32>
      %37 = arith.mulf %35, %36 : vector<8x32xf32>
      %38 = arith.truncf %37 : vector<8x32xf32> to vector<8x32xbf16>
      %c0_24 = arith.constant 0 : index
      %c0_25 = arith.constant 0 : index
      %c64 = arith.constant 64 : index
      %39 = vector.load %arg6[%c0_24, %c0_25, %c64] : memref<1x8x128xbf16, #tpu.memory_space<vmem>>, vector<1x8x32xbf16>
      %40 = vector.shape_cast %39 : vector<1x8x32xbf16> to vector<8x32xbf16>
      %41 = vector.shape_cast %38 : vector<8x32xbf16> to vector<1x8x32xbf16>
      tpu.vector_store %arg6[%c0_24, %c0_25, %c64], %41 {strides = array<i32>} : memref<1x8x128xbf16, #tpu.memory_space<vmem>>, vector<1x8x32xbf16>,
      %c3 = arith.constant 3 : index
      %c0_26 = arith.constant 0 : index
      %c0_27 = arith.constant 0 : index
      %42 = vector.load %arg8[%c3, %c0_26, %c0_27] : memref<4x8x1xf32, #tpu.memory_space<vmem>>, vector<1x8x1xf32>
      %43 = vector.shape_cast %42 : vector<1x8x1xf32> to vector<8x1xf32>
      %44 = tpu.reciprocal %43 {approx = true} : vector<8x1xf32> -> vector<8x1xf32>
      %c3_28 = arith.constant 3 : index
      %c0_29 = arith.constant 0 : index
      %c0_30 = arith.constant 0 : index
      %45 = vector.load %arg9[%c3_28, %c0_29, %c0_30] : memref<4x8x32xf32, #tpu.memory_space<vmem>>, vector<1x8x32xf32>
      %46 = vector.shape_cast %45 : vector<1x8x32xf32> to vector<8x32xf32>
      %47 = vector.broadcast %44 : vector<8x1xf32> to vector<8x32xf32>
      %48 = arith.mulf %46, %47 : vector<8x32xf32>
      %49 = arith.truncf %48 : vector<8x32xf32> to vector<8x32xbf16>
      %c0_31 = arith.constant 0 : index
      %c0_32 = arith.constant 0 : index
      %c96 = arith.constant 96 : index
      %50 = vector.load %arg6[%c0_31, %c0_32, %c96] : memref<1x8x128xbf16, #tpu.memory_space<vmem>>, vector<1x8x32xbf16>
      %51 = vector.shape_cast %50 : vector<1x8x32xbf16> to vector<8x32xbf16>
      %52 = vector.shape_cast %49 : vector<8x32xbf16> to vector<1x8x32xbf16>
      tpu.vector_store %arg6[%c0_31, %c0_32, %c96], %52 {strides = array<i32>} : memref<1x8x128xbf16, #tpu.memory_space<vmem>>, vector<1x8x32xbf16>,
    } else {
    }
    return
  }
  func.func @transform_0(%arg0: i32, %arg1: i32, %arg2: i32) -> (i32, i32, i32) {
    %c0_i32 = arith.constant 0 : i32
    %c0_i32_0 = arith.constant 0 : i32
    return %arg0, %arg1, %c0_i32 : i32, i32, i32
  }
  func.func @transform_1(%arg0: i32, %arg1: i32, %arg2: i32) -> (i32, i32, i32) {
    %0 = arith.minsi %arg2, %arg1 : i32
    %c1_i32 = arith.constant 1 : i32
    %c0_i32 = arith.constant 0 : i32
    return %arg0, %0, %c1_i32 : i32, i32, i32
  }
  func.func @transform_2(%arg0: i32, %arg1: i32, %arg2: i32) -> (i32, i32, i32) {
    %0 = arith.minsi %arg2, %arg1 : i32
    %c2_i32 = arith.constant 2 : i32
    %c0_i32 = arith.constant 0 : i32
    return %arg0, %0, %c2_i32 : i32, i32, i32
  }
  func.func @transform_3(%arg0: i32, %arg1: i32, %arg2: i32) -> (i32, i32, i32) {
    %c0_i32 = arith.constant 0 : i32
    %c0_i32_0 = arith.constant 0 : i32
    return %arg0, %arg1, %c0_i32 : i32, i32, i32
  }
}

module attributes {stable_mosaic.version = 11 : i64} {
  func.func @kernel(%arg0: i32, %arg1: i32, %arg2: i32, %arg3: memref<16x512xbf16, #tpu.memory_space<vmem>>, %arg4: memref<512x128xbf16, #tpu.memory_space<vmem>>, %arg5: memref<1x128xf32, #tpu.memory_space<vmem>>, %arg6: memref<16x128xbf16, #tpu.memory_space<vmem>>, %arg7: memref<16x128xbf16, #tpu.memory_space<vmem>>) attributes {dimension_semantics = [#tpu.dimension_semantics<parallel>, #tpu.dimension_semantics<parallel>, #tpu.dimension_semantics<arbitrary>], iteration_bounds = array<i64: 1, 1, 1>, scalar_prefetch = 0 : i64, scratch_operands = 0 : i64, tpu.core_type = #tpu.core_type<tc>, window_params = [{transform_indices = @transform_0, window_bounds = array<i64: 16, 512>}, {transform_indices = @transform_1, window_bounds = array<i64: 512, 128>}, {transform_indices = @transform_2, window_bounds = array<i64: 1, 128>}, {transform_indices = @transform_3, window_bounds = array<i64: 16, 128>}, {transform_indices = @transform_4, window_bounds = array<i64: 16, 128>}]} {
    %c0 = arith.constant 0 : index
    %c0_0 = arith.constant 0 : index
    %0 = vector.load %arg3[%c0, %c0_0] : memref<16x512xbf16, #tpu.memory_space<vmem>>, vector<16x512xbf16>
    %c0_1 = arith.constant 0 : index
    %c0_2 = arith.constant 0 : index
    %1 = vector.load %arg4[%c0_1, %c0_2] : memref<512x128xbf16, #tpu.memory_space<vmem>>, vector<512x128xbf16>
    %cst = arith.constant dense<0.000000e+00> : vector<16x128xf32>
    %2 = tpu.matmul %0, %1, %cst {dimension_numbers = #tpu.dot_dimension_numbers<[1], [0], [0], [1], [0, 0, 1, 1], [], []>} : vector<16x512xbf16>, vector<512x128xbf16>, vector<16x128xf32> -> vector<16x128xf32>
    %c0_3 = arith.constant 0 : index
    %c0_4 = arith.constant 0 : index
    %3 = vector.load %arg5[%c0_3, %c0_4] : memref<1x128xf32, #tpu.memory_space<vmem>>, vector<1x128xf32>
    %4 = vector.broadcast %3 : vector<1x128xf32> to vector<16x128xf32>
    %5 = arith.addf %2, %4 : vector<16x128xf32>
    %c0_5 = arith.constant 0 : index
    %c0_6 = arith.constant 0 : index
    %6 = vector.load %arg6[%c0_5, %c0_6] : memref<16x128xbf16, #tpu.memory_space<vmem>>, vector<16x128xbf16>
    %7 = arith.extf %6 : vector<16x128xbf16> to vector<16x128xf32>
    %8 = arith.addf %5, %7 : vector<16x128xf32>
    %9 = arith.truncf %8 : vector<16x128xf32> to vector<16x128xbf16>
    %c0_7 = arith.constant 0 : index
    %c0_8 = arith.constant 0 : index
    %10 = vector.load %arg7[%c0_7, %c0_8] : memref<16x128xbf16, #tpu.memory_space<vmem>>, vector<16x128xbf16>
    tpu.vector_store %arg7[%c0_7, %c0_8], %9 {strides = array<i32>} : memref<16x128xbf16, #tpu.memory_space<vmem>>, vector<16x128xbf16>,
    return
  }
  func.func @transform_0(%arg0: i32, %arg1: i32, %arg2: i32) -> (i32, i32) {
    %c0_i32 = arith.constant 0 : i32
    return %arg0, %arg2 : i32, i32
  }
  func.func @transform_1(%arg0: i32, %arg1: i32, %arg2: i32) -> (i32, i32) {
    %c0_i32 = arith.constant 0 : i32
    return %arg2, %arg1 : i32, i32
  }
  func.func @transform_2(%arg0: i32, %arg1: i32, %arg2: i32) -> (i32, i32) {
    %c0_i32 = arith.constant 0 : i32
    %c0_i32_0 = arith.constant 0 : i32
    return %c0_i32, %arg1 : i32, i32
  }
  func.func @transform_3(%arg0: i32, %arg1: i32, %arg2: i32) -> (i32, i32) {
    %c0_i32 = arith.constant 0 : i32
    return %arg0, %arg1 : i32, i32
  }
  func.func @transform_4(%arg0: i32, %arg1: i32, %arg2: i32) -> (i32, i32) {
    %c0_i32 = arith.constant 0 : i32
    return %arg0, %arg1 : i32, i32
  }
}

module attributes {stable_mosaic.version = 11 : i64} {
  func.func @kernel(%arg0: i32, %arg1: i32, %arg2: i32, %arg3: memref<16x128xbf16, #tpu.memory_space<vmem>>, %arg4: memref<128x128xbf16, #tpu.memory_space<vmem>>, %arg5: memref<1x128xf32, #tpu.memory_space<vmem>>, %arg6: memref<1x128xf32, #tpu.memory_space<vmem>>, %arg7: memref<16x128xf32, #tpu.memory_space<vmem>>) attributes {dimension_semantics = [#tpu.dimension_semantics<parallel>, #tpu.dimension_semantics<parallel>, #tpu.dimension_semantics<arbitrary>], iteration_bounds = array<i64: 1, 1, 1>, scalar_prefetch = 0 : i64, scratch_operands = 0 : i64, tpu.core_type = #tpu.core_type<tc>, window_params = [{transform_indices = @transform_0, window_bounds = array<i64: 16, 128>}, {transform_indices = @transform_1, window_bounds = array<i64: 128, 128>}, {pipeline_mode = #tpu.pipeline_mode<synchronous>, transform_indices = @transform_2, window_bounds = array<i64: 1, 128>}, {pipeline_mode = #tpu.pipeline_mode<synchronous>, transform_indices = @transform_3, window_bounds = array<i64: 1, 128>}, {transform_indices = @transform_4, window_bounds = array<i64: 16, 128>}]} {
    %c0 = arith.constant 0 : index
    %c0_0 = arith.constant 0 : index
    %0 = vector.load %arg3[%c0, %c0_0] : memref<16x128xbf16, #tpu.memory_space<vmem>>, vector<16x128xbf16>
    %1 = arith.extf %0 : vector<16x128xbf16> to vector<16x128xf32>
    %cst = arith.constant dense<0.000000e+00> : vector<16xf32>
    %2 = vector.multi_reduction <add>, %1, %cst [1] : vector<16x128xf32> to vector<16xf32>
    %3 = vector.shape_cast %2 : vector<16xf32> to vector<16x1xf32>
    %cst_1 = arith.constant 1.280000e+02 : f32
    %4 = vector.broadcast %cst_1 : f32 to vector<16x1xf32>
    %5 = arith.divf %3, %4 : vector<16x1xf32>
    %6 = vector.broadcast %5 : vector<16x1xf32> to vector<16x128xf32>
    %7 = arith.subf %1, %6 : vector<16x128xf32>
    %8 = arith.mulf %7, %7 : vector<16x128xf32>
    %cst_2 = arith.constant dense<0.000000e+00> : vector<16xf32>
    %9 = vector.multi_reduction <add>, %8, %cst_2 [1] : vector<16x128xf32> to vector<16xf32>
    %10 = vector.shape_cast %9 : vector<16xf32> to vector<16x1xf32>
    %cst_3 = arith.constant 1.280000e+02 : f32
    %11 = vector.broadcast %cst_3 : f32 to vector<16x1xf32>
    %12 = arith.divf %10, %11 : vector<16x1xf32>
    %13 = vector.broadcast %5 : vector<16x1xf32> to vector<16x128xf32>
    %14 = arith.subf %1, %13 : vector<16x128xf32>
    %cst_4 = arith.constant 9.99999974E-6 : f32
    %15 = vector.broadcast %cst_4 : f32 to vector<16x1xf32>
    %16 = arith.addf %12, %15 : vector<16x1xf32>
    %17 = math.rsqrt %16 : vector<16x1xf32>
    %18 = vector.broadcast %17 : vector<16x1xf32> to vector<16x128xf32>
    %19 = arith.mulf %14, %18 : vector<16x128xf32>
    %c0_5 = arith.constant 0 : index
    %c0_6 = arith.constant 0 : index
    %20 = vector.load %arg5[%c0_5, %c0_6] : memref<1x128xf32, #tpu.memory_space<vmem>>, vector<1x128xf32>
    %21 = vector.broadcast %20 : vector<1x128xf32> to vector<16x128xf32>
    %22 = arith.mulf %19, %21 : vector<16x128xf32>
    %c0_7 = arith.constant 0 : index
    %c0_8 = arith.constant 0 : index
    %23 = vector.load %arg6[%c0_7, %c0_8] : memref<1x128xf32, #tpu.memory_space<vmem>>, vector<1x128xf32>
    %24 = vector.broadcast %23 : vector<1x128xf32> to vector<16x128xf32>
    %25 = arith.addf %22, %24 : vector<16x128xf32>
    %26 = arith.truncf %25 : vector<16x128xf32> to vector<16x128xbf16>
    %c0_9 = arith.constant 0 : index
    %c0_10 = arith.constant 0 : index
    %27 = vector.load %arg4[%c0_9, %c0_10] : memref<128x128xbf16, #tpu.memory_space<vmem>>, vector<128x128xbf16>
    %cst_11 = arith.constant dense<0.000000e+00> : vector<16x128xf32>
    %28 = tpu.matmul %26, %27, %cst_11 {dimension_numbers = #tpu.dot_dimension_numbers<[1], [0], [0], [1], [0, 0, 1, 1], [], []>} : vector<16x128xbf16>, vector<128x128xbf16>, vector<16x128xf32> -> vector<16x128xf32>
    %c0_12 = arith.constant 0 : index
    %c0_13 = arith.constant 0 : index
    %29 = vector.load %arg7[%c0_12, %c0_13] : memref<16x128xf32, #tpu.memory_space<vmem>>, vector<16x128xf32>
    tpu.vector_store %arg7[%c0_12, %c0_13], %28 {strides = array<i32>} : memref<16x128xf32, #tpu.memory_space<vmem>>, vector<16x128xf32>,
    return
  }
  func.func @transform_0(%arg0: i32, %arg1: i32, %arg2: i32) -> (i32, i32) {
    %c0_i32 = arith.constant 0 : i32
    return %arg0, %arg2 : i32, i32
  }
  func.func @transform_1(%arg0: i32, %arg1: i32, %arg2: i32) -> (i32, i32) {
    %c0_i32 = arith.constant 0 : i32
    return %arg2, %arg1 : i32, i32
  }
  func.func @transform_2(%arg0: i32, %arg1: i32, %arg2: i32) -> (i32, i32) {
    %c0_i32 = arith.constant 0 : i32
    %c0_i32_0 = arith.constant 0 : i32
    %c0_i32_1 = arith.constant 0 : i32
    return %c0_i32, %c0_i32_0 : i32, i32
  }
  func.func @transform_3(%arg0: i32, %arg1: i32, %arg2: i32) -> (i32, i32) {
    %c0_i32 = arith.constant 0 : i32
    %c0_i32_0 = arith.constant 0 : i32
    %c0_i32_1 = arith.constant 0 : i32
    return %c0_i32, %c0_i32_0 : i32, i32
  }
  func.func @transform_4(%arg0: i32, %arg1: i32, %arg2: i32) -> (i32, i32) {
    %c0_i32 = arith.constant 0 : i32
    return %arg0, %arg1 : i32, i32
  }
}

</mosaic_0001>

<bundles_post_ra>
// kernel: gpt_forward.13
= control target key start
LH: loop header
LB: loop body
LE: loop exit
PB: predicated region body
PF: predicated region fallthrough
CT: control target
= control target key end

     0   :  { %v221_v0 = vmov 0.0   ;;  %vm222_vm0 = vmmov 0   ;;  %s284_s1 = inlined_call_operand.vmem [shape: bf16[128,128], index: 1, kind: input, shape index: {}]   ;;  %s285_s0 = inlined_call_operand.vmem [shape: bf16[16,128], index: 0, kind: input, shape index: {}]   ;;  %s286_s2 = inlined_call_operand.vmem [shape: f32[1,128], index: 2, kind: input, shape index: {}]   ;;  %s287_s3 = inlined_call_operand.vmem [shape: bf16[16,128], index: 3, kind: input, shape index: {}]   ;;  %s288_s4 = inlined_call_operand.vmem [shape: bf16[16,128], index: 4, kind: output, shape index: {}]  }
   0x1   :  { %190 = vmatprep.subr.bf16.mxu0 %v221_v0  ;;  %v212_v1 = vld [vmem:[%s284_s1] sm:$0xff]   ;;  %206 = vmatprep.mubr.msk.bf16.mxu0 %vm222_vm0, %v221_v0  ;;  %v213_v2 = vld [vmem:[%s284_s1 + $0x8] sm:$0xff]   ;;  %v214_v3 = vld [vmem:[%s284_s1 + $0x10] sm:$0xff]  }
   0x2   :  { %191 = vmatpush3.bf16.msra.mxu0 %v212_v1  ;;  %v215_v4 = vld [vmem:[%s284_s1 + $0x18] sm:$0xff]   ;;  %v216_v5 = vld [vmem:[%s284_s1 + $0x20] sm:$0xff]   ;;  %v217_v6 = vld [vmem:[%s284_s1 + $0x28] sm:$0xff]  }
   0x3   :  { %192 = vmatprep.subr.bf16.mxu0 %v221_v0  ;;  %v218_v7 = vld [vmem:[%s284_s1 + $0x30] sm:$0xff]   ;;  %v219_v8 = vld [vmem:[%s284_s1 + $0x38] sm:$0xff]   ;;  %v220_v9 = vld [vmem:[%s285_s0] sm:$0xff]  }
   0x4   :  { %v158_v10 = vld [vmem:[%s286_s2] ss:$0 sm:$0xff] }
   0x5   :  { %v173_v11 = vld [vmem:[%s287_s3] sm:$0xff]  }
   0x6   :  { %193 = vmatpush3.bf16.msra.mxu0 %v213_v2  ;;  %v174_v14 = vunpack.c.l.bf16 %v173_v11  ;;  %v175_v16 = vunpack.c.h.bf16 %v173_v11 }
   0x7   :  { %194 = vmatprep.subr.bf16.mxu0 %v221_v0 }
   0xa   :  { %195 = vmatpush3.bf16.msra.mxu0 %v214_v3 }
   0xb   :  { %196 = vmatprep.subr.bf16.mxu0 %v221_v0 }
   0xe   :  { %197 = vmatpush3.bf16.msra.mxu0 %v215_v4 }
   0xf   :  { %198 = vmatprep.subr.bf16.mxu0 %v221_v0 }
  0x12   :  { %199 = vmatpush3.bf16.msra.mxu0 %v216_v5 }
  0x13   :  { %200 = vmatprep.subr.bf16.mxu0 %v221_v0 }
  0x16   :  { %201 = vmatpush3.bf16.msra.mxu0 %v217_v6 }
  0x17   :  { %202 = vmatprep.subr.bf16.mxu0 %v221_v0 }
  0x1a   :  { %203 = vmatpush3.bf16.msra.mxu0 %v218_v7 }
  0x1b   :  { %204 = vmatprep.subr.bf16.mxu0 %v221_v0 }
  0x1e   :  { %205 = vmatpush3.bf16.msra.mxu0 %v219_v8 }
  0x21   :  { %207 = vmatmul.mubr.bf16.vlgmr.msra.gmra.mrb[0].mxu0 %v220_v9 }
  0xf4   :  { %v131_v12 = vpop.f32.mrb[0].mxu0 }
  0xf5   :  { %v132_v13 = vadd.f32 %v158_v10, %v131_v12  ;;  %v208_v15 = vpop.f32.mrb[1].mxu0 }
  0xf6   :  { %v134_v17 = vpop.f32.mrb[2].mxu0 }
  0xf7   :  { %v135_v18 = vadd.f32 %v158_v10, %v134_v17  ;;  %v209_v19 = vpop.f32.mrb[3].mxu0  ;;  %v142_v20 = vadd.f32 %v174_v14, %v132_v13 }
  0xf9   :  { %v143_v21 = vadd.f32 %v175_v16, %v135_v18 }
  0xfb   :  { %v179_v22 = vpack.c.bf16 %v143_v21, %v142_v20 }
  0xfd   :  { %180 = vst [vmem:[%s288_s4] sm:$0xff] %v179_v22  }

// kernel: gpt_forward.11
= control target key start
LH: loop header
LB: loop body
LE: loop exit
PB: predicated region body
PF: predicated region fallthrough
CT: control target
= control target key end

     0   :  { %v442_v4 = vmov 0.0   ;;  %v443_v31 = vmov 0   ;;  %vm444_vm0 = vmmov 0   ;;  %s582_s0 = inlined_call_operand.vmem [shape: bf16[16,128], index: 0, kind: input, shape index: {}]   ;;  %s583_s1 = inlined_call_operand.vmem [shape: bf16[128,384], index: 1, kind: input, shape index: {}]   ;;  %s584_s2 = inlined_call_operand.vmem [shape: f32[1,128], index: 2, kind: input, shape index: {}]   ;;  %s585_s3 = inlined_call_operand.vmem [shape: f32[1,128], index: 3, kind: input, shape index: {}]   ;;  %s586_s4 = inlined_call_operand.vmem [shape: bf16[16,384], index: 4, kind: output, shape index: {}]  }
   0x1   :  { %v371_v0 = vld [vmem:[%s582_s0] sm:$0xff]   ;;  %383 = vmatprep.subr.bf16.mxu1 %v442_v4  ;;  %v409_v6 = vld [vmem:[%s583_s1 + $0x8] ss:$12 sps:$4 sm:$0xff]   ;;  %v416_v19 = vld [vmem:[%s583_s1 + $0x30] ss:$12 sps:$4 sm:$0xff]   ;;  %256 = vmatprep.mubr.bf16.mxu0 %v443_v31 }
   0x2   :  { %v372_v1 = vunpack.c.l.bf16 %v371_v0  ;;  %v373_v2 = vunpack.c.h.bf16 %v371_v0  ;;  %v406_v3 = vld [vmem:[%s583_s1 + $0x4] ss:$12 sps:$4 sm:$0xff]   ;;  %v408_v5 = vld [vmem:[%s583_s1] ss:$12 sps:$4 sm:$0xff]   ;;  %v410_v7 = vld [vmem:[%s583_s1 + $0x1c] ss:$12 sps:$4 sm:$0xff]   ;;  %384 = vmatpush3.bf16.msra.mxu1 %v409_v6  ;;  %399 = vmatprep.mubr.msk.bf16.mxu1 %vm444_vm0, %v442_v4 }
   0x3   :  { %224 = vmatprep.subr.bf16.mxu0 %v406_v3  ;;  %385 = vmatprep.subr.bf16.mxu1 %v442_v4  ;;  %v412_v16 = vld [vmem:[%s583_s1 + $0x18] ss:$12 sps:$4 sm:$0xff]   ;;  %v413_v17 = vld [vmem:[%s583_s1 + $0x20] ss:$12 sps:$4 sm:$0xff]   ;;  %v420_v22 = vld [vmem:[%s583_s1 + $0x48] ss:$12 sps:$4 sm:$0xff]  }
   0x4   :  { %22 = vadd.xlane.f32.xlu0 %v372_v1  ;;  %225 = vmatpush1.bf16.msra.mxu0 %v408_v5  ;;  %v414_v18 = vld [vmem:[%s583_s1 + $0x34] ss:$12 sps:$4 sm:$0xff]   ;;  %v417_v20 = vld [vmem:[%s583_s1 + $0x38] ss:$12 sps:$4 sm:$0xff]   ;;  %v421_v23 = vld [vmem:[%s583_s1 + $0x50] ss:$12 sps:$4 sm:$0xff]  }
   0x5   :  { %226 = vmatprep.subr.bf16.mxu0 %v410_v7  ;;  %v418_v21 = vld [vmem:[%s583_s1 + $0x4c] ss:$12 sps:$4 sm:$0xff]   ;;  %v422_v24 = vld [vmem:[%s583_s1 + $0x64] ss:$12 sps:$4 sm:$0xff]   ;;  %v425_v26 = vld [vmem:[%s583_s1 + $0x68] ss:$12 sps:$4 sm:$0xff]  }
   0x6   :  { %386 = vmatpush3.bf16.msra.mxu1 %v413_v17  ;;  %v424_v25 = vld [vmem:[%s583_s1 + $0x60] ss:$12 sps:$4 sm:$0xff]   ;;  %v426_v27 = vld [vmem:[%s583_s1 + $0x7c] ss:$12 sps:$4 sm:$0xff]   ;;  %v428_v28 = vld [vmem:[%s583_s1 + $0x78] ss:$12 sps:$4 sm:$0xff]  }
   0x7   :  { %387 = vmatprep.subr.bf16.mxu1 %v442_v4  ;;  %v429_v29 = vld [vmem:[%s583_s1 + $0x80] ss:$12 sps:$4 sm:$0xff]   ;;  %v432_v32 = vld [vmem:[%s583_s1 + $0x90] ss:$12 sps:$4 sm:$0xff]   ;;  %v433_v33 = vld [vmem:[%s583_s1 + $0x98] ss:$12 sps:$4 sm:$0xff]  }
   0x8   :  { %24 = vadd.xlane.f32.xlu0 %v373_v2  ;;  %227 = vmatpush1.bf16.msra.mxu0 %v412_v16  ;;  %v430_v30 = vld [vmem:[%s583_s1 + $0x94] ss:$12 sps:$4 sm:$0xff]   ;;  %v434_v34 = vld [vmem:[%s583_s1 + $0xac] ss:$12 sps:$4 sm:$0xff]   ;;  %v437_v36 = vld [vmem:[%s583_s1 + $0xb0] ss:$12 sps:$4 sm:$0xff]  }
   0x9   :  { %228 = vmatprep.subr.bf16.mxu0 %v414_v18  ;;  %v436_v35 = vld [vmem:[%s583_s1 + $0xa8] ss:$12 sps:$4 sm:$0xff]   ;;  %v336_v45 = vld [vmem:[%s584_s2] ss:$0 sm:$0xff] }
   0xa   :  { %388 = vmatpush3.bf16.msra.mxu1 %v417_v20  ;;  %v337_v49 = vld [vmem:[%s585_s3] ss:$0 sm:$0xff] }
   0xb   :  { %389 = vmatprep.subr.bf16.mxu1 %v442_v4 }
   0xc   :  { %229 = vmatpush1.bf16.msra.mxu0 %v416_v19 }
   0xd   :  { %230 = vmatprep.subr.bf16.mxu0 %v418_v21 }
   0xe   :  { %390 = vmatpush3.bf16.msra.mxu1 %v421_v23 }
   0xf   :  { %391 = vmatprep.subr.bf16.mxu1 %v442_v4 }
  0x10   :  { %231 = vmatpush1.bf16.msra.mxu0 %v420_v22 }
  0x11   :  { %232 = vmatprep.subr.bf16.mxu0 %v422_v24 }
  0x12   :  { %392 = vmatpush3.bf16.msra.mxu1 %v425_v26 }
  0x13   :  { %393 = vmatprep.subr.bf16.mxu1 %v442_v4 }
  0x14   :  { %233 = vmatpush1.bf16.msra.mxu0 %v424_v25 }
  0x15   :  { %234 = vmatprep.subr.bf16.mxu0 %v426_v27 }
  0x16   :  { %394 = vmatpush3.bf16.msra.mxu1 %v429_v29 }
  0x17   :  { %395 = vmatprep.subr.bf16.mxu1 %v442_v4 }
  0x18   :  { %235 = vmatpush1.bf16.msra.mxu0 %v428_v28 }
  0x19   :  { %236 = vmatprep.subr.bf16.mxu0 %v430_v30 }
  0x1a   :  { %396 = vmatpush3.bf16.msra.mxu1 %v433_v33 }
  0x1b   :  { %397 = vmatprep.subr.bf16.mxu1 %v442_v4 }
  0x1c   :  { %237 = vmatpush1.bf16.msra.mxu0 %v432_v32 }
  0x1d   :  { %238 = vmatprep.subr.bf16.mxu0 %v434_v34 }
  0x1e   :  { %398 = vmatpush3.bf16.msra.mxu1 %v437_v36 }
  0x20   :  { %239 = vmatpush1.bf16.msra.mxu0 %v436_v35 }
  0x91   :  { %v23_v8 = vpop.xlane.xlu0 %22 }
  0x92   :  { %v27_v9 = vmul.f32 0.0078125, %v23_v8 }
  0x94   :  { %v487_v10 = vsub.f32 %v372_v1, %v27_v9 }
  0x95   :  { %v25_v11 = vpop.xlane.xlu0 %24 }
  0x96   :  { %v28_v12 = vmul.f32 0.0078125, %v25_v11  ;;  %v31_v13 = vmul.f32 %v487_v10, %v487_v10 }
  0x98   :  { %v491_v14 = vsub.f32 %v373_v2, %v28_v12  ;;  %33 = vadd.xlane.f32.xlu1 %v31_v13 }
  0x9a   :  { %v32_v15 = vmul.f32 %v491_v14, %v491_v14 }
  0x9c   :  { %35 = vadd.xlane.f32.xlu1 %v32_v15 }
 0x125   :  { %v34_v37 = vpop.xlane.xlu1 %33 }
 0x126   :  { %v37_v38 = vmul.f32 0.0078125, %v34_v37 }
 0x128   :  { %v39_v39 = vadd.f32 1e-05, %v37_v38 }
 0x129   :  { %v36_v40 = vpop.xlane.xlu1 %35 }
 0x12a   :  { %438 = vrsqrt.f32 %v39_v39  ;;  %v38_v41 = vmul.f32 0.0078125, %v36_v40 }
 0x12c   :  { %v40_v42 = vadd.f32 1e-05, %v38_v41 }
 0x12e   :  { %440 = vrsqrt.f32 %v40_v42 }
 0x134   :  { %v439_v43 = vpop.eup %438 }
 0x135   :  { %v43_v44 = vmul.f32 %v439_v43, %v487_v10 }
 0x137   :  { %v52_v48 = vmul.f32 %v336_v45, %v43_v44 }
 0x138   :  { %v441_v46 = vpop.eup %440 }
 0x139   :  { %v44_v47 = vmul.f32 %v441_v46, %v491_v14  ;;  %v61_v51 = vadd.f32 %v337_v49, %v52_v48 }
 0x13b   :  { %v53_v50 = vmul.f32 %v336_v45, %v44_v47 }
 0x13d   :  { %v62_v52 = vadd.f32 %v337_v49, %v53_v50 }
 0x13f   :  { %v63_v53 = vpack.c.bf16 %v62_v52, %v61_v51 }
 0x141   :  { %257 = vmatmul.mubr.bf16.vlgmr.msra.gmra.mrb[0].mxu0 %v63_v53  ;;  %400 = vmatmul.mubr.bf16.vlgmr.msra.gmra.mrb[0].mxu1 %v63_v53 }
 0x214   :  { %v258_v54 = vpop.f32.mrb[0].mxu0  ;;  %v301_v55 = vpop.f32.mrb[0].mxu1 }
 0x215   :  { %v367_v56 = vpack.c.bf16 %v301_v55, %v301_v55  ;;  %v260_v57 = vpop.f32.mrb[1].mxu0  ;;  %v401_v58 = vpop.f32.mrb[1].mxu1 }
 0x216   :  { %v366_v59 = vpack.c.bf16 %v260_v57, %v258_v54  ;;  %v262_v60 = vpop.f32.mrb[2].mxu0  ;;  %v304_v61 = vpop.f32.mrb[2].mxu1 }
 0x217   :  { %329 = vst [vmem:[%s586_s4 + $0x8] sm:$0xf] %v367_v56  ;;  %v369_v62 = vpack.c.bf16 %v304_v61, %v304_v61  ;;  %v264_v63 = vpop.f32.mrb[3].mxu0  ;;  %v402_v0 = vpop.f32.mrb[3].mxu1 }
 0x218   :  { %328 = vst [vmem:[%s586_s4] sm:$0xff] %v366_v59  ;;  %v368_v1 = vpack.c.bf16 %v264_v63, %v262_v60 }
 0x219   :  { %331 = vst [vmem:[%s586_s4 + $0x14] sm:$0xf] %v369_v62 }
 0x21a   :  { %330 = vst [vmem:[%s586_s4 + $0xc] sm:$0xff] %v368_v1 }

// kernel: gpt_forward.14
= control target key start
LH: loop header
LB: loop body
LE: loop exit
PB: predicated region body
PF: predicated region fallthrough
CT: control target
= control target key end

     0   :  { %v586_v37 = vmov 0   ;;  %v101_v61 = vlaneseq  ;;  %s803_s0 = inlined_call_operand.vmem [shape: bf16[16,128], index: 0, kind: input, shape index: {}]   ;;  %s804_s1 = inlined_call_operand.vmem [shape: bf16[128,512], index: 1, kind: input, shape index: {}]   ;;  %s805_s2 = inlined_call_operand.vmem [shape: f32[1,128], index: 2, kind: input, shape index: {}]   ;;  %s806_s3 = inlined_call_operand.vmem [shape: f32[1,128], index: 3, kind: input, shape index: {}]   ;;  %s807_s4 = inlined_call_operand.vmem [shape: f32[1,512], index: 4, kind: input, shape index: {}]   ;;  %s808_s5 = inlined_call_operand.vmem [shape: bf16[16,512], index: 5, kind: output, shape index: {}]  }
   0x1   :  { %v514_v0 = vld [vmem:[%s803_s0] sm:$0xff]   ;;  %v520_v4 = vld [vmem:[%s804_s1 + $0xc] ss:$16 sps:$4 sm:$0xff]   ;;  %v523_v6 = vld [vmem:[%s804_s1 + $0x8] ss:$16 sps:$4 sm:$0xff]   ;;  %313 = vmatprep.mubr.bf16.mxu0 %v586_v37  ;;  %356 = vmatprep.mubr.bf16.mxu1 %v586_v37 }
   0x2   :  { %v515_v1 = vunpack.c.l.bf16 %v514_v0  ;;  %v516_v2 = vunpack.c.h.bf16 %v514_v0  ;;  %v518_v3 = vld [vmem:[%s804_s1 + $0x4] ss:$16 sps:$4 sm:$0xff]   ;;  %v522_v5 = vld [vmem:[%s804_s1] ss:$16 sps:$4 sm:$0xff]   ;;  %324 = vmatprep.subr.bf16.mxu1 %v520_v4  ;;  %v526_v8 = vld [vmem:[%s804_s1 + $0x2c] ss:$16 sps:$4 sm:$0xff]  }
   0x3   :  { %281 = vmatprep.subr.bf16.mxu0 %v518_v3  ;;  %v524_v7 = vld [vmem:[%s804_s1 + $0x24] ss:$16 sps:$4 sm:$0xff]   ;;  %325 = vmatpush1.bf16.msra.mxu1 %v523_v6  ;;  %v528_v17 = vld [vmem:[%s804_s1 + $0x20] ss:$16 sps:$4 sm:$0xff]   ;;  %v529_v18 = vld [vmem:[%s804_s1 + $0x28] ss:$16 sps:$4 sm:$0xff]  }
   0x4   :  { %25 = vadd.xlane.f32.xlu0 %v515_v1  ;;  %282 = vmatpush1.bf16.msra.mxu0 %v522_v5  ;;  %v530_v19 = vld [vmem:[%s804_s1 + $0x44] ss:$16 sps:$4 sm:$0xff]   ;;  %v532_v20 = vld [vmem:[%s804_s1 + $0x4c] ss:$16 sps:$4 sm:$0xff]   ;;  %v534_v21 = vld [vmem:[%s804_s1 + $0x40] ss:$16 sps:$4 sm:$0xff]  }
   0x5   :  { %283 = vmatprep.subr.bf16.mxu0 %v524_v7  ;;  %326 = vmatprep.subr.bf16.mxu1 %v526_v8  ;;  %v535_v22 = vld [vmem:[%s804_s1 + $0x48] ss:$16 sps:$4 sm:$0xff]   ;;  %v536_v23 = vld [vmem:[%s804_s1 + $0x64] ss:$16 sps:$4 sm:$0xff]   ;;  %v538_v24 = vld [vmem:[%s804_s1 + $0x6c] ss:$16 sps:$4 sm:$0xff]  }
   0x6   :  { %v540_v25 = vld [vmem:[%s804_s1 + $0x60] ss:$16 sps:$4 sm:$0xff]   ;;  %v541_v26 = vld [vmem:[%s804_s1 + $0x68] ss:$16 sps:$4 sm:$0xff]   ;;  %v542_v27 = vld [vmem:[%s804_s1 + $0x84] ss:$16 sps:$4 sm:$0xff]  }
   0x7   :  { %327 = vmatpush1.bf16.msra.mxu1 %v529_v18  ;;  %v544_v28 = vld [vmem:[%s804_s1 + $0x8c] ss:$16 sps:$4 sm:$0xff]   ;;  %v546_v29 = vld [vmem:[%s804_s1 + $0x80] ss:$16 sps:$4 sm:$0xff]   ;;  %v547_v30 = vld [vmem:[%s804_s1 + $0x88] ss:$16 sps:$4 sm:$0xff]  }
   0x8   :  { %27 = vadd.xlane.f32.xlu0 %v516_v2  ;;  %284 = vmatpush1.bf16.msra.mxu0 %v528_v17  ;;  %v548_v31 = vld [vmem:[%s804_s1 + $0xa4] ss:$16 sps:$4 sm:$0xff]   ;;  %v550_v32 = vld [vmem:[%s804_s1 + $0xac] ss:$16 sps:$4 sm:$0xff]   ;;  %v552_v33 = vld [vmem:[%s804_s1 + $0xa0] ss:$16 sps:$4 sm:$0xff]  }
   0x9   :  { %285 = vmatprep.subr.bf16.mxu0 %v530_v19  ;;  %328 = vmatprep.subr.bf16.mxu1 %v532_v20  ;;  %v553_v34 = vld [vmem:[%s804_s1 + $0xa8] ss:$16 sps:$4 sm:$0xff]   ;;  %v554_v35 = vld [vmem:[%s804_s1 + $0xc4] ss:$16 sps:$4 sm:$0xff]   ;;  %v556_v36 = vld [vmem:[%s804_s1 + $0xcc] ss:$16 sps:$4 sm:$0xff]  }
   0xa   :  { %v558_v38 = vld [vmem:[%s804_s1 + $0xc0] ss:$16 sps:$4 sm:$0xff]   ;;  %v559_v39 = vld [vmem:[%s804_s1 + $0xc8] ss:$16 sps:$4 sm:$0xff]   ;;  %v560_v40 = vld [vmem:[%s804_s1 + $0xe4] ss:$16 sps:$4 sm:$0xff]  }
   0xb   :  { %329 = vmatpush1.bf16.msra.mxu1 %v535_v22  ;;  %v562_v41 = vld [vmem:[%s804_s1 + $0xec] ss:$16 sps:$4 sm:$0xff]   ;;  %v564_v42 = vld [vmem:[%s804_s1 + $0xe0] ss:$16 sps:$4 sm:$0xff]   ;;  %v565_v43 = vld [vmem:[%s804_s1 + $0xe8] ss:$16 sps:$4 sm:$0xff]  }
   0xc   :  { %286 = vmatpush1.bf16.msra.mxu0 %v534_v21  ;;  %330 = vmatprep.subr.bf16.mxu1 %v538_v24  ;;  %v471_v52 = vld [vmem:[%s805_s2] ss:$0 sm:$0xff]  ;;  %v102_v62 = vshrl.u32 %v101_v61, 7 }
   0xd   :  { %287 = vmatprep.subr.bf16.mxu0 %v536_v23  ;;  %v472_v56 = vld [vmem:[%s806_s3] ss:$0 sm:$0xff] }
   0xe   :  { %v103_v63 = vsub.s32 0, %v102_v62  ;;  %v111_v0 = vsub.s32 2, %v102_v62  ;;  %v115_v3 = vsub.s32 3, %v102_v62 }
   0xf   :  { %331 = vmatpush1.bf16.msra.mxu1 %v541_v26 }
  0x10   :  { %288 = vmatpush1.bf16.msra.mxu0 %v540_v25  ;;  %332 = vmatprep.subr.bf16.mxu1 %v544_v28 }
  0x11   :  { %289 = vmatprep.subr.bf16.mxu0 %v542_v27 }
  0x13   :  { %333 = vmatpush1.bf16.msra.mxu1 %v547_v30 }
  0x14   :  { %290 = vmatpush1.bf16.msra.mxu0 %v546_v29  ;;  %334 = vmatprep.subr.bf16.mxu1 %v550_v32 }
  0x15   :  { %291 = vmatprep.subr.bf16.mxu0 %v548_v31 }
  0x17   :  { %335 = vmatpush1.bf16.msra.mxu1 %v553_v34 }
  0x18   :  { %292 = vmatpush1.bf16.msra.mxu0 %v552_v33  ;;  %336 = vmatprep.subr.bf16.mxu1 %v556_v36 }
  0x19   :  { %293 = vmatprep.subr.bf16.mxu0 %v554_v35 }
  0x1b   :  { %337 = vmatpush1.bf16.msra.mxu1 %v559_v39 }
  0x1c   :  { %294 = vmatpush1.bf16.msra.mxu0 %v558_v38  ;;  %338 = vmatprep.subr.bf16.mxu1 %v562_v41 }
  0x1d   :  { %295 = vmatprep.subr.bf16.mxu0 %v560_v40 }
  0x1f   :  { %339 = vmatpush1.bf16.msra.mxu1 %v565_v43 }
  0x20   :  { %296 = vmatpush1.bf16.msra.mxu0 %v564_v42 }
  0x91   :  { %v26_v9 = vpop.xlane.xlu0 %25 }
  0x92   :  { %v30_v10 = vmul.f32 0.0078125, %v26_v9 }
  0x94   :  { %v638_v11 = vsub.f32 %v515_v1, %v30_v10  ;;  %v99_v1 = vld [vmem:[%s807_s4] sm:$0xf] }
  0x95   :  { %v28_v12 = vpop.xlane.xlu0 %27  ;;  %v104_v4 = vrot.slane %v99_v1, %v103_v63  ;;  %v112_v5 = vrot.slane %v99_v1, %v111_v0  ;;  %v116_v7 = vrot.slane %v99_v1, %v115_v3 }
  0x96   :  { %v31_v13 = vmul.f32 0.0078125, %v28_v12  ;;  %v34_v14 = vmul.f32 %v638_v11, %v638_v11 }
  0x98   :  { %v642_v15 = vsub.f32 %v516_v2, %v31_v13  ;;  %36 = vadd.xlane.f32.xlu1 %v34_v14  ;;  %v107_v2 = vsub.s32 1, %v102_v62 }
  0x9a   :  { %v35_v16 = vmul.f32 %v642_v15, %v642_v15  ;;  %v108_v6 = vrot.slane %v99_v1, %v107_v2 }
  0x9c   :  { %38 = vadd.xlane.f32.xlu1 %v35_v16 }
 0x125   :  { %v37_v44 = vpop.xlane.xlu1 %36 }
 0x126   :  { %v40_v45 = vmul.f32 0.0078125, %v37_v44 }
 0x128   :  { %v42_v46 = vadd.f32 1e-05, %v40_v45 }
 0x129   :  { %v39_v47 = vpop.xlane.xlu1 %38 }
 0x12a   :  { %566 = vrsqrt.f32 %v42_v46  ;;  %v41_v48 = vmul.f32 0.0078125, %v39_v47 }
 0x12c   :  { %v43_v49 = vadd.f32 1e-05, %v41_v48 }
 0x12e   :  { %568 = vrsqrt.f32 %v43_v49 }
 0x134   :  { %v567_v50 = vpop.eup %566 }
 0x135   :  { %v46_v51 = vmul.f32 %v567_v50, %v638_v11 }
 0x137   :  { %v55_v55 = vmul.f32 %v471_v52, %v46_v51 }
 0x138   :  { %v569_v53 = vpop.eup %568 }
 0x139   :  { %v47_v54 = vmul.f32 %v569_v53, %v642_v15  ;;  %v64_v58 = vadd.f32 %v472_v56, %v55_v55 }
 0x13b   :  { %v56_v57 = vmul.f32 %v471_v52, %v47_v54 }
 0x13d   :  { %v65_v59 = vadd.f32 %v472_v56, %v56_v57 }
 0x13f   :  { %v66_v60 = vpack.c.bf16 %v65_v59, %v64_v58 }
 0x141   :  { %314 = vmatmul.mubr.bf16.vlgmr.msra.gmra.mrb[0].mxu0 %v66_v60  ;;  %357 = vmatmul.mubr.bf16.vlgmr.msra.gmra.mrb[0].mxu1 %v66_v60 }
 0x214   :  { %v315_v8 = vpop.f32.mrb[0].mxu0  ;;  %v358_v9 = vpop.f32.mrb[0].mxu1 }
 0x215   :  { %v735_v10 = vadd.f32 %v315_v8, %v104_v4  ;;  %v737_v11 = vadd.f32 %v358_v9, %v112_v5  ;;  %v317_v12 = vpop.f32.mrb[1].mxu0  ;;  %v360_v13 = vpop.f32.mrb[1].mxu1 }
 0x216   :  { %v739_v14 = vadd.f32 %v317_v12, %v108_v6  ;;  %v741_v15 = vadd.f32 %v360_v13, %v116_v7  ;;  %v319_v16 = vpop.f32.mrb[2].mxu0  ;;  %v362_v17 = vpop.f32.mrb[2].mxu1 }
 0x217   :  { %v375_v18 = vmul.f32 0.044715, %v735_v10  ;;  %v377_v19 = vmul.f32 0.044715, %v737_v11  ;;  %v749_v24 = vadd.f32 %v319_v16, %v104_v4  ;;  %v751_v25 = vadd.f32 %v362_v17, %v112_v5  ;;  %v321_v26 = vpop.f32.mrb[3].mxu0  ;;  %v364_v27 = vpop.f32.mrb[3].mxu1 }
 0x218   :  { %v376_v20 = vmul.f32 0.044715, %v739_v14  ;;  %v378_v21 = vmul.f32 0.044715, %v741_v15  ;;  %v755_v30 = vadd.f32 %v321_v26, %v108_v6  ;;  %v766_v40 = vadd.f32 %v364_v27, %v116_v7 }
 0x219   :  { %v383_v22 = vmul.f32 %v375_v18, %v735_v10  ;;  %v385_v23 = vmul.f32 %v377_v19, %v737_v11  ;;  %v379_v33 = vmul.f32 0.044715, %v749_v24  ;;  %v381_v36 = vmul.f32 0.044715, %v751_v25 }
 0x21a   :  { %v384_v28 = vmul.f32 %v376_v20, %v739_v14  ;;  %v386_v29 = vmul.f32 %v378_v21, %v741_v15  ;;  %v380_v44 = vmul.f32 0.044715, %v755_v30  ;;  %v382_v53 = vmul.f32 0.044715, %v766_v40 }
 0x21b   :  { %v391_v31 = vmul.f32 %v383_v22, %v735_v10  ;;  %v393_v32 = vmul.f32 %v385_v23, %v737_v11  ;;  %v387_v39 = vmul.f32 %v379_v33, %v749_v24  ;;  %v389_v43 = vmul.f32 %v381_v36, %v751_v25 }
 0x21c   :  { %v392_v34 = vmul.f32 %v384_v28, %v739_v14  ;;  %v394_v35 = vmul.f32 %v386_v29, %v741_v15  ;;  %v388_v51 = vmul.f32 %v380_v44, %v755_v30  ;;  %v390_v57 = vmul.f32 %v382_v53, %v766_v40 }
 0x21d   :  { %v399_v37 = vadd.f32 %v391_v31, %v735_v10  ;;  %v401_v38 = vadd.f32 %v393_v32, %v737_v11  ;;  %v395_v47 = vmul.f32 %v387_v39, %v749_v24  ;;  %v397_v50 = vmul.f32 %v389_v43, %v751_v25 }
 0x21e   :  { %v400_v41 = vadd.f32 %v392_v34, %v739_v14  ;;  %v402_v42 = vadd.f32 %v394_v35, %v741_v15  ;;  %v396_v55 = vmul.f32 %v388_v51, %v755_v30  ;;  %v398_v60 = vmul.f32 %v390_v57, %v766_v40 }
 0x21f   :  { %v407_v45 = vmul.f32 0.7978846, %v399_v37  ;;  %v409_v46 = vmul.f32 0.7978846, %v401_v38  ;;  %v403_v52 = vadd.f32 %v395_v47, %v749_v24  ;;  %v405_v54 = vadd.f32 %v397_v50, %v751_v25 }
 0x220   :  { %v408_v48 = vmul.f32 0.7978846, %v400_v41  ;;  %v410_v49 = vmul.f32 0.7978846, %v402_v42  ;;  %v404_v59 = vadd.f32 %v396_v55, %v755_v30  ;;  %v406_v62 = vadd.f32 %v398_v60, %v766_v40 }
 0x221   :  { %570 = vtanh.f32 %v407_v45  ;;  %v411_v56 = vmul.f32 0.7978846, %v403_v52  ;;  %v413_v58 = vmul.f32 0.7978846, %v405_v54  ;;  %v367_v2 = vmul.f32 0.5, %v735_v10 }
 0x222   :  { %572 = vtanh.f32 %v409_v46  ;;  %v412_v61 = vmul.f32 0.7978846, %v404_v59  ;;  %v414_v63 = vmul.f32 0.7978846, %v406_v62  ;;  %v369_v5 = vmul.f32 0.5, %v737_v11 }
 0x223   :  { %574 = vtanh.f32 %v408_v48  ;;  %v368_v9 = vmul.f32 0.5, %v739_v14  ;;  %v370_v17 = vmul.f32 0.5, %v741_v15  ;;  %v371_v10 = vmul.f32 0.5, %v749_v24 }
 0x224   :  { %576 = vtanh.f32 %v410_v49  ;;  %v372_v29 = vmul.f32 0.5, %v755_v30  ;;  %v373_v15 = vmul.f32 0.5, %v751_v25  ;;  %v374_v33 = vmul.f32 0.5, %v766_v40 }
 0x225   :  { %578 = vtanh.f32 %v411_v56 }
 0x226   :  { %580 = vtanh.f32 %v413_v58 }
 0x227   :  { %582 = vtanh.f32 %v412_v61 }
 0x228   :  { %584 = vtanh.f32 %v414_v63 }
 0x22b   :  { %v571_v0 = vpop.eup %570 }
 0x22c   :  { %v573_v1 = vpop.eup %572  ;;  %v423_v3 = vadd.f32 1.0, %v571_v0 }
 0x22d   :  { %v575_v4 = vpop.eup %574  ;;  %v425_v6 = vadd.f32 1.0, %v573_v1 }
 0x22e   :  { %v577_v7 = vpop.eup %576  ;;  %v431_v8 = vmul.f32 %v423_v3, %v367_v2  ;;  %v424_v12 = vadd.f32 1.0, %v575_v4 }
 0x22f   :  { %v579_v13 = vpop.eup %578  ;;  %v433_v16 = vmul.f32 %v425_v6, %v369_v5  ;;  %v426_v18 = vadd.f32 1.0, %v577_v7 }
 0x230   :  { %v581_v19 = vpop.eup %580  ;;  %v432_v20 = vmul.f32 %v424_v12, %v368_v9  ;;  %v427_v21 = vadd.f32 1.0, %v579_v13 }
 0x231   :  { %v434_v22 = vmul.f32 %v426_v18, %v370_v17  ;;  %v583_v23 = vpop.eup %582  ;;  %v429_v11 = vadd.f32 1.0, %v581_v19 }
 0x232   :  { %v509_v26 = vpack.c.bf16 %v432_v20, %v431_v8  ;;  %v435_v28 = vmul.f32 %v427_v21, %v371_v10  ;;  %v428_v14 = vadd.f32 1.0, %v583_v23  ;;  %v585_v31 = vpop.eup %584 }
 0x233   :  { %v510_v27 = vpack.c.bf16 %v434_v22, %v433_v16  ;;  %v437_v32 = vmul.f32 %v429_v11, %v373_v15  ;;  %v430_v34 = vadd.f32 1.0, %v585_v31 }
 0x234   :  { %463 = vst [vmem:[%s808_s5] sm:$0xff] %v509_v26  ;;  %v436_v24 = vmul.f32 %v428_v14, %v372_v29 }
 0x235   :  { %464 = vst [vmem:[%s808_s5 + $0x8] sm:$0xff] %v510_v27  ;;  %v438_v36 = vmul.f32 %v430_v34, %v374_v33 }
 0x236   :  { %v511_v35 = vpack.c.bf16 %v436_v24, %v435_v28 }
 0x237   :  { %v512_v30 = vpack.c.bf16 %v438_v36, %v437_v32 }
 0x238   :  { %465 = vst [vmem:[%s808_s5 + $0x10] sm:$0xff] %v511_v35 }
 0x239   :  { %466 = vst [vmem:[%s808_s5 + $0x18] sm:$0xff] %v512_v30 }

// kernel: gpt_forward.12
= control target key start
LH: loop header
LB: loop body
LE: loop exit
PB: predicated region body
PF: predicated region fallthrough
CT: control target
= control target key end

     0   :  { %s1312_s12 = smov 0   ;;  %s1314_s13 = smov 0   ;;  %s1505_s0 = inlined_call_operand.vmem [shape: bf16[2,8,384], index: 0, kind: input, shape index: {}, may-alias: {0,1,2}]   ;;  %s1506_s1 = inlined_call_operand.vmem [shape: bf16[2,8,384], index: 1, kind: input, shape index: {}, may-alias: {0,1,2}]   ;;  %s1507_s2 = inlined_call_operand.vmem [shape: bf16[2,8,384], index: 2, kind: input, shape index: {}, may-alias: {0,1,2}]   ;;  %s1508_s3 = inlined_call_operand.vmem [shape: bf16[2,8,128], index: 3, kind: output, shape index: {}]  }
   0x1   :  { %s1316_s14 = smov 0  }
   0x2 LB: > { %s32_s15 = sadd.s32 1, %s1279_s13  ;;  %p1111_p0 = scmp.ge.s32.totalorder %s1283_s14, 1  ;;  %s1283_s14 = sphi %s1316_s14, %s13_s14   ;;  %s1279_s13 = sphi %s1314_s13, %s1510_s13   ;;  %s1275_s12 = sphi %s1312_s12, %s1509_s12  }
   0x3   : > { %p34_p1 = scmp.ge.s32.totalorder %s32_s15, 2  ;;  %p214_p2 = scmp.lt.s32.totalorder %s1283_s14, 3 }
   0x5   : > { %s1512_s15 = smov (%p34_p1, %s32_s15), 0  ;;  %p215_p3 = pnand %p1111_p0, %p214_p2 }
   0x6   : > { %p268_p4 = scmp.lt.s32.totalorder (!%p215_p3), %s1275_s12, 1  ;;  %vm326_vm0 = vcmask (!%p215_p3), 261120   ;;  %v1285_v0 = vmov (!%p215_p3), 0.0   ;;  %vm1286_vm1 = vmmov (!%p215_p3), 0   ;;  %vm317_vm2 = vcmask (!%p215_p3), 7168   ;;  %s1289_s23 = smov (!%p215_p3), 96  }
   0x7   : > { %218 = sbr.rel (%p215_p3) target bundleno = 1471 (0x5bf), region = 32  ;;  %1153 = vmatprep.subr.bf16.mxu0 (!%p215_p3), %v1285_v0  ;;  %327 = vst.msk [vmem:[#allocation4] sm:$0xff] (!%p215_p3), %vm326_vm0, %v1285_v0  ;;  %328 = vst.msk [vmem:[#allocation4 + $0x8] sm:$0xff] (!%p215_p3), %vm326_vm0, %v1285_v0  ;;  %1155 = vmatprep.mubr.msk.bf16.mxu0 (!%p215_p3), %vm1286_vm1, %v1285_v0  ;;  %v1287_v4 = vmov (!%p215_p3), -inf   ;;  %v336_v5 = vlaneseq (!%p215_p3)  ;;  %vm399_vm4 = vcmask (!%p215_p3), 64512   ;;  %v1288_v15 = vmov (!%p215_p3), 0  }
   0x8   : > { %329 = vst.msk [vmem:[#allocation4 + $0x10] sm:$0xff] (!%p215_p3), %vm326_vm0, %v1285_v0  ;;  %330 = vst.msk [vmem:[#allocation4 + $0x18] sm:$0xff] (!%p215_p3), %vm326_vm0, %v1285_v0  ;;  %1159 = vmatprep.subr.bf16.mxu1 (!%p215_p3), %v1285_v0  ;;  %1161 = vmatprep.mubr.msk.bf16.mxu1 (!%p215_p3), %vm1286_vm1, %v1285_v0  ;;  %s1290_s24 = smov (!%p215_p3), 64   ;;  %s1291_s25 = smov (!%p215_p3), 32   ;;  %vm434_vm5 = vcmask (!%p215_p3), 1043456   ;;  %vm914_vm6 = vcmask (!%p215_p3), 257024  }
   0x9   : > { %318 = vst.msk [vmem:[#allocation2] sm:$0xff] (!%p215_p3), %vm317_vm2, %v1287_v4  ;;  %319 = vst.msk [vmem:[#allocation2 + $0x8] sm:$0xff] (!%p215_p3), %vm317_vm2, %v1287_v4  ;;  %v1374_v6 = vshrl.u32 (!%p215_p3), %v336_v5, 7  ;;  %v1376_v7 = vand.u32 (!%p215_p3), 127, %v336_v5  ;;  %1233 = vset.pattern.permute.xlu0 (!%p215_p3), %v1288_v15  ;;  %1234 = vset.pattern.permute.xlu1 (!%p215_p3), %v1288_v15  ;;  %vm934_vm7 = vcmask (!%p215_p3), 519424   ;;  %vm954_vm8 = vcmask (!%p215_p3), 781824  }
   0xa   : > { %320 = vst.msk [vmem:[#allocation2 + $0x10] sm:$0xff] (!%p215_p3), %vm317_vm2, %v1287_v4  ;;  %321 = vst.msk [vmem:[#allocation2 + $0x18] sm:$0xff] (!%p215_p3), %vm317_vm2, %v1287_v4  ;;  %vm974_vm9 = vcmask (!%p215_p3), 1044224  }
   0xb   : > { %322 = vst.msk [vmem:[#allocation3] sm:$0xff] (!%p215_p3), %vm317_vm2, %v1285_v0  ;;  %323 = vst.msk [vmem:[#allocation3 + $0x8] sm:$0xff] (!%p215_p3), %vm317_vm2, %v1285_v0  ;;  %vm345_vm3 = vcmp.gt.s32.totalorder (!%p215_p3), %v1376_v7, %v1374_v6 }
   0xc   : > { %324 = vst.msk [vmem:[#allocation3 + $0x10] sm:$0xff] (!%p215_p3), %vm317_vm2, %v1285_v0  ;;  %325 = vst.msk [vmem:[#allocation3 + $0x18] sm:$0xff] (!%p215_p3), %vm317_vm2, %v1285_v0 }
   0xe   : > { %s1514_s12 = smov (!%p268_p4, %s1275_s12), 1 }
   0xf   : > { %s1347_s16 = smul.u32 12, %s1514_s12  ;;  %s1115_s29 = sshll.u32 %s1514_s12, 2 }
  0x10   : > { %v1390_v18 = vld [vmem:[#allocation2] sm:$0xff]  ;;  %v1442_v63 = vld [vmem:[#allocation2 + $0x8] sm:$0xff]  ;;  %s1484_s5 = scalar_lea.vmem %s1508_s3, %s1115_s29 }
  0x11   : > { %s1047_s19 = scalar_lea.vmem %s1506_s1, %s1347_s16  ;;  %s276_s22 = scalar_lea.vmem %s1505_s0, %s1347_s16  ;;  %v680_v4 = vld [vmem:[#allocation2 + $0x10] sm:$0xff]  ;;  %v817_v6 = vld [vmem:[#allocation2 + $0x18] sm:$0xff] }
  0x12   : > { %v1116_v1 = vld [vmem:[%s1047_s19 + $0x4] sm:$0xf]  ;;  %v346_v3 = vld [vmem:[%s276_s22] sm:$0xf]  ;;  %s1053_s28 = scalar_lea.vmem %s1507_s2, %s1347_s16 }
  0x13   : > { %v354_v2 = vsel %vm326_vm0, %v1116_v1, 0  ;;  %v1121_v16 = vcombine.low %v1116_v1, %v1116_v1  ;;  %v1120_v17 = vcombine.low %v346_v3, %v346_v3  ;;  %v1404_v22 = vld [vmem:[%s1053_s28 + $0x8] sm:$0xf] }
  0x14   : > { %1154 = vmatpush3.bf16.xpose.msra.mxu0 %v354_v2  ;;  %v436_v23 = vsel %vm434_vm5, %v1404_v22, 0 }
  0x15   : > { %1171 = vmatprep.subr.bf16.mxu0 %v1285_v0  ;;  %489 = vrot.lane.b32.xlu1 %v1121_v16, %s1289_s23 }
  0x16   : > { %1160 = vmatpush3.bf16.msra.mxu1 %v436_v23 }
  0x17   : > { %1165 = vmatprep.subr.bf16.mxu1 %v1285_v0 }
  0x19   : > { %484 = vrot.lane.b32.xlu1 %v1120_v17, %s1289_s23 }
  0x1b   : > { %1156 = vmatmul.mubr.msk.bf16.vlgmr.msra.gmra.mrb[0].mxu0 %vm326_vm0, %v346_v3 }
  0x1c   : > { %1173 = vmatprep.mubr.msk.bf16.mxu0 %vm1286_vm1, %v1285_v0 }
  0x1d   : > { %629 = vrot.lane.b32.xlu1 %v1121_v16, %s1290_s24 }
  0x21   : > { %627 = vrot.lane.b32.xlu1 %v1120_v17, %s1290_s24 }
  0x25   : > { %766 = vrot.lane.b32.xlu1 %v1121_v16, %s1291_s25 }
  0x29   : > { %764 = vrot.lane.b32.xlu1 %v1120_v17, %s1291_s25 }
  0x87   : > { %v490_v27 = vpop.permute.xlu1 %489 }
  0x88   : > { %v495_v30 = vsel %vm326_vm0, %v490_v27, 0 }
  0x8b   : > { %v485_v28 = vpop.permute.xlu1 %484 }
  0x8f   : > { %v630_v32 = vpop.permute.xlu1 %629 }
  0x90   : > { %v635_v34 = vsel %vm326_vm0, %v630_v32, 0 }
  0x93   : > { %v628_v33 = vpop.permute.xlu1 %627 }
  0x97   : > { %v767_v35 = vpop.permute.xlu1 %766 }
  0x98   : > { %v772_v36 = vsel %vm326_vm0, %v767_v35, 0 }
  0x9b   : > { %v765_v37 = vpop.permute.xlu1 %764 }
  0xee   : > { %v390_v8 = vpop.f32.mrb[0].mxu0 }
  0xef   : > { %v396_v9 = vmul.f32 0.17677669, %v390_v8  ;;  %v1157_v10 = vpop.f32.mrb[1].mxu0 }
  0xf0   : > { %v393_v11 = vpop.f32.mrb[2].mxu0 }
  0xf1   : > { %v1158_v12 = vpop.f32.mrb[3].mxu0  ;;  %v397_v13 = vsel %vm345_vm3, -inf, %v396_v9  ;;  %v1123_v11 = vcombine.low %v1404_v22, %v1404_v22 }
  0xf2   : > { %v400_v14 = vsel %vm399_vm4, %v397_v13, -inf }
  0xf3   : > { %401 = vmax.xlane.f32.xlu0 %v400_v14 }
 0x180   : > { %v402_v19 = vpop.xlane.xlu0 %401 }
 0x181   : > { %v1393_v20 = vmax.f32 %v1390_v18, %v402_v19 }
 0x183   : > { %v404_v21 = vsub.f32 %v1390_v18, %v1393_v20  ;;  %480 = vst.msk [vmem:[#allocation2] sm:$0xff] %vm317_vm2, %v1393_v20  ;;  %409 = vperm.xlu0 %1233, %v1393_v20  }
 0x202   : > { %v410_v24 = vpop.permute.xlu0 %409 }
 0x203   : > { %v412_v25 = vsub.f32 %v397_v13, %v410_v24 }
 0x205   : > { %v413_v26 = vmul.f32 1.442695, %v412_v25 }
 0x207   : > { %1237 = vpow2.f32 %v413_v26 }
 0x211   : > { %v1409_v29 = vpop.eup %1237 }
 0x212   : > { %v430_v31 = vpack.c.bf16 %v1409_v29, %v1409_v29  ;;  %v417_v13 = vsel %vm399_vm4, %v1409_v29, 0.0 }
 0x214   : > { %1162 = vmatmul.mubr.msk.bf16.vlgmr.msra.gmra.mrb[0].mxu1 %vm399_vm4, %v430_v31 }
 0x215   : > { %1166 = vmatpush3.bf16.xpose.msra.mxu1 %v495_v30  ;;  %1167 = vmatprep.mubr.msk.bf16.mxu1 %vm1286_vm1, %v1285_v0 }
 0x216   : > { %1177 = vmatprep.subr.bf16.mxu1 %v1285_v0 }
 0x21c   : > { %1168 = vmatmul.mubr.msk.bf16.vlgmr.msra.gmra.mrb[4].mxu1 %vm326_vm0, %v485_v28 }
 0x21d   : > { %1178 = vmatpush3.bf16.xpose.msra.mxu1 %v635_v34  ;;  %1179 = vmatprep.mubr.msk.bf16.mxu1 %vm1286_vm1, %v1285_v0 }
 0x21e   : > { %1189 = vmatprep.subr.bf16.mxu1 %v1285_v0 }
 0x224   : > { %1180 = vmatmul.mubr.msk.bf16.vlgmr.msra.gmra.mrb[8].mxu1 %vm326_vm0, %v628_v33 }
 0x225   : > { %1190 = vmatpush3.bf16.xpose.msra.mxu1 %v772_v36  ;;  %1191 = vmatprep.mubr.msk.bf16.mxu1 %vm1286_vm1, %v1285_v0 }
 0x22c   : > { %1192 = vmatmul.mubr.msk.bf16.vlgmr.msra.gmra.mrb[12].mxu1 %vm326_vm0, %v765_v37 }
 0x2e7   : > { %v1428_v38 = vpop.f32.mrb[0].mxu1 }
 0x2e8   : > { %v1163_v39 = vpop.f32.mrb[1].mxu1 }
 0x2e9   : > { %v475_v40 = vpop.f32.mrb[2].mxu1 }
 0x2ea   : > { %v1164_v41 = vpop.f32.mrb[3].mxu1  ;;  %v405_v40 = vmul.f32 1.442695, %v404_v21 }
 0x2ef   : > { %v531_v42 = vpop.f32.mrb[4].mxu1 }
 0x2f0   : > { %v537_v43 = vmul.f32 0.17677669, %v531_v42  ;;  %v1169_v44 = vpop.f32.mrb[5].mxu1 }
 0x2f1   : > { %v534_v45 = vpop.f32.mrb[6].mxu1 }
 0x2f2   : > { %v1170_v46 = vpop.f32.mrb[7].mxu1  ;;  %v538_v47 = vsel %vm345_vm3, -inf, %v537_v43 }
 0x2f3   : > { %v541_v48 = vsel %vm399_vm4, %v538_v47, -inf }
 0x2f4   : > { %542 = vmax.xlane.f32.xlu1 %v541_v48 }
 0x2f7   : > { %v671_v49 = vpop.f32.mrb[8].mxu1 }
 0x2f8   : > { %v677_v50 = vmul.f32 0.17677669, %v671_v49  ;;  %v1181_v51 = vpop.f32.mrb[9].mxu1 }
 0x2f9   : > { %v674_v52 = vpop.f32.mrb[10].mxu1 }
 0x2fa   : > { %v1182_v53 = vpop.f32.mrb[11].mxu1  ;;  %v678_v54 = vsel %vm345_vm3, -inf, %v677_v50  ;;  %v557_v52 = vld [vmem:[#allocation3 + $0x8] sm:$0xff] }
 0x2fb   : > { %v681_v55 = vsel %vm399_vm4, %v678_v54, -inf }
 0x2fc   : > { %682 = vmax.xlane.f32.xlu0 %v681_v55 }
 0x2ff   : > { %v808_v56 = vpop.f32.mrb[12].mxu1 }
 0x300   : > { %v814_v57 = vmul.f32 0.17677669, %v808_v56  ;;  %v1193_v58 = vpop.f32.mrb[13].mxu1  ;;  %v697_v56 = vld [vmem:[#allocation3 + $0x10] sm:$0xff] }
 0x301   : > { %v811_v59 = vpop.f32.mrb[14].mxu1 }
 0x302   : > { %v1194_v60 = vpop.f32.mrb[15].mxu1  ;;  %v815_v61 = vsel %vm345_vm3, -inf, %v814_v57 }
 0x303   : > { %v818_v62 = vsel %vm399_vm4, %v815_v61, -inf }
 0x304   : > { %819 = vmax.xlane.f32.xlu1 %v818_v62  ;;  %v423_v62 = vld [vmem:[#allocation4] sm:$0xff] }
 0x381   : > { %v543_v1 = vpop.xlane.xlu1 %542 }
 0x382   : > { %v544_v2 = vmax.f32 %v1442_v63, %v543_v1 }
 0x384   : > { %v545_v3 = vsub.f32 %v1442_v63, %v544_v2  ;;  %626 = vst.msk [vmem:[#allocation2 + $0x8] sm:$0xff] %vm317_vm2, %v544_v2  ;;  %550 = vperm.xlu1 %1234, %v544_v2  }
 0x386   : > { %v546_v42 = vmul.f32 1.442695, %v545_v3 }
 0x389   : > { %v683_v5 = vpop.xlane.xlu0 %682 }
 0x38a   : > { %v684_v8 = vmax.f32 %v680_v4, %v683_v5 }
 0x38c   : > { %v685_v9 = vsub.f32 %v680_v4, %v684_v8  ;;  %763 = vst.msk [vmem:[#allocation2 + $0x10] sm:$0xff] %vm317_vm2, %v684_v8  ;;  %690 = vperm.xlu0 %1233, %v684_v8  }
 0x38e   : > { %v686_v44 = vmul.f32 1.442695, %v685_v9 }
 0x391   : > { %v820_v7 = vpop.xlane.xlu1 %819 }
 0x392   : > { %v821_v10 = vmax.f32 %v817_v6, %v820_v7 }
 0x394   : > { %v822_v12 = vsub.f32 %v817_v6, %v821_v10  ;;  %900 = vst.msk [vmem:[#allocation2 + $0x18] sm:$0xff] %vm317_vm2, %v821_v10  ;;  %827 = vperm.xlu1 %1234, %v821_v10  }
 0x396   : > { %v823_v43 = vmul.f32 1.442695, %v822_v12 }
 0x398   : > { %576 = vrot.lane.b32.xlu1 %v1123_v11, %s1289_s23 }
 0x39c   : > { %713 = vrot.lane.b32.xlu1 %v1123_v11, %s1290_s24 }
 0x3a0   : > { %850 = vrot.lane.b32.xlu1 %v1123_v11, %s1291_s25 }
 0x3c4   : > { %418 = vadd.xlane.f32.xlu1 %v417_v13 }
 0x403   : > { %v551_v14 = vpop.permute.xlu1 %550 }
 0x404   : > { %v553_v15 = vsub.f32 %v538_v47, %v551_v14  ;;  %v415_v47 = vld [vmem:[#allocation3] sm:$0xff] }
 0x406   : > { %v554_v16 = vmul.f32 1.442695, %v553_v15 }
 0x408   : > { %1239 = vpow2.f32 %v554_v16  ;;  %v565_v16 = vld [vmem:[#allocation4 + $0x8] sm:$0xff] }
 0x40b   : > { %v691_v17 = vpop.permute.xlu0 %690 }
 0x40c   : > { %v693_v19 = vsub.f32 %v678_v54, %v691_v17 }
 0x40e   : > { %v694_v22 = vmul.f32 1.442695, %v693_v19 }
 0x410   : > { %1241 = vpow2.f32 %v694_v22 }
 0x412   : > { %v1240_v23 = vpop.eup %1239 }
 0x413   : > { %v828_v24 = vpop.permute.xlu1 %827  ;;  %v559_v25 = vsel %vm399_vm4, %v1240_v23, 0.0  ;;  %v572_v31 = vpack.c.bf16 %v1240_v23, %v1240_v23 }
 0x414   : > { %v830_v26 = vsub.f32 %v815_v61, %v828_v24  ;;  %560 = vadd.xlane.f32.xlu0 %v559_v25  ;;  %v834_v61 = vld [vmem:[#allocation3 + $0x18] sm:$0xff] }
 0x416   : > { %v831_v27 = vmul.f32 1.442695, %v830_v26  ;;  %v705_v26 = vld [vmem:[#allocation4 + $0x10] sm:$0xff] }
 0x417   : > { %v577_v28 = vpop.permute.xlu1 %576 }
 0x418   : > { %1243 = vpow2.f32 %v831_v27  ;;  %v582_v29 = vsel %vm434_vm5, %v577_v28, 0 }
 0x419   : > { %1172 = vmatpush3.bf16.msra.mxu0 %v582_v29  ;;  %1245 = vpow2.f32 %v405_v40 }
 0x41a   : > { %v1242_v30 = vpop.eup %1241  ;;  %1183 = vmatprep.subr.bf16.mxu0 %v1285_v0  ;;  %1247 = vpow2.f32 %v546_v42 }
 0x41b   : > { %v699_v32 = vsel %vm399_vm4, %v1242_v30, 0.0  ;;  %v714_v33 = vpop.permute.xlu1 %713  ;;  %v712_v37 = vpack.c.bf16 %v1242_v30, %v1242_v30  ;;  %1249 = vpow2.f32 %v823_v43 }
 0x41c   : > { %700 = vadd.xlane.f32.xlu0 %v699_v32  ;;  %1174 = vmatmul.mubr.msk.bf16.vlgmr.msra.gmra.mrb[4].mxu0 %vm399_vm4, %v572_v31  ;;  %v719_v34 = vsel %vm434_vm5, %v714_v33, 0  ;;  %1251 = vpow2.f32 %v686_v44  ;;  %v842_v33 = vld [vmem:[#allocation4 + $0x18] sm:$0xff] }
 0x41d   : > { %1184 = vmatpush3.bf16.msra.mxu0 %v719_v34  ;;  %1185 = vmatprep.mubr.msk.bf16.mxu0 %vm1286_vm1, %v1285_v0 }
 0x41e   : > { %1195 = vmatprep.subr.bf16.mxu0 %v1285_v0 }
 0x41f   : > { %v851_v35 = vpop.permute.xlu1 %850 }
 0x420   : > { %v856_v39 = vsel %vm434_vm5, %v851_v35, 0 }
 0x422   : > { %v1244_v36 = vpop.eup %1243 }
 0x423   : > { %v836_v41 = vsel %vm399_vm4, %v1244_v36, 0.0  ;;  %v849_v45 = vpack.c.bf16 %v1244_v36, %v1244_v36  ;;  %v1246_v18 = vpop.eup %1245 }
 0x424   : > { %1186 = vmatmul.mubr.msk.bf16.vlgmr.msra.gmra.mrb[8].mxu0 %vm399_vm4, %v712_v37  ;;  %837 = vadd.xlane.f32.xlu1 %v836_v41  ;;  %v1248_v20 = vpop.eup %1247 }
 0x425   : > { %1196 = vmatpush3.bf16.msra.mxu0 %v856_v39  ;;  %1197 = vmatprep.mubr.msk.bf16.mxu0 %vm1286_vm1, %v1285_v0  ;;  %v1250_v21 = vpop.eup %1249  ;;  %v416_v0 = vmul.f32 %v1246_v18, %v415_v47  ;;  %v558_v53 = vmul.f32 %v1248_v20, %v557_v52 }
 0x426   : > { %v1252_v46 = vpop.eup %1251  ;;  %v835_v63 = vmul.f32 %v1250_v21, %v834_v61 }
 0x427   : > { %v698_v57 = vmul.f32 %v1252_v46, %v697_v56 }
 0x42c   : > { %1198 = vmatmul.mubr.msk.bf16.vlgmr.msra.gmra.mrb[12].mxu0 %vm399_vm4, %v849_v45 }
 0x432   : > { %426 = vperm.xlu0 %1233, %v1246_v18  }
 0x435   : > { %568 = vperm.xlu1 %1234, %v1248_v20  }
 0x436   : > { %845 = vperm.xlu0 %1233, %v1250_v21  }
 0x439   : > { %708 = vperm.xlu1 %1234, %v1252_v46  }
 0x451   : > { %v419_v48 = vpop.xlane.xlu1 %418 }
 0x452   : > { %v420_v49 = vadd.f32 %v419_v48, %v416_v0 }
 0x454   : > { %422 = vst.msk [vmem:[#allocation3] sm:$0xff] %vm317_vm2, %v420_v49 }
 0x45b   : > { %v904_v50 = vld [vmem:[#allocation3] sm:$0xff] }
 0x45c   : > { %1253 = vrcp.f32 %v904_v50 }
 0x466   : > { %v1254_v51 = vpop.eup %1253 }
 0x467   : > { %909 = vperm.xlu1 %1234, %v1254_v51  }
 0x4a1   : > { %v561_v54 = vpop.xlane.xlu0 %560 }
 0x4a2   : > { %v562_v55 = vadd.f32 %v561_v54, %v558_v53 }
 0x4a4   : > { %563 = vst.msk [vmem:[#allocation3 + $0x8] sm:$0xff] %vm317_vm2, %v562_v55 }
 0x4a9   : > { %v701_v58 = vpop.xlane.xlu0 %700 }
 0x4aa   : > { %v702_v59 = vadd.f32 %v701_v58, %v698_v57 }
 0x4ab   : > { %v917_v60 = vld [vmem:[#allocation3 + $0x8] sm:$0xff] }
 0x4ac   : > { %703 = vst.msk [vmem:[#allocation3 + $0x10] sm:$0xff] %vm317_vm2, %v702_v59  ;;  %1255 = vrcp.f32 %v917_v60 }
 0x4b1   : > { %v838_v1 = vpop.xlane.xlu1 %837  ;;  %v427_v2 = vpop.permute.xlu0 %426 }
 0x4b2   : > { %v839_v3 = vadd.f32 %v838_v1, %v835_v63  ;;  %v429_v4 = vmul.f32 %v427_v2, %v423_v62 }
 0x4b3   : > { %v937_v5 = vld [vmem:[#allocation3 + $0x10] sm:$0xff] }
 0x4b4   : > { %840 = vst.msk [vmem:[#allocation3 + $0x18] sm:$0xff] %vm317_vm2, %v839_v3  ;;  %v478_v8 = vadd.f32 %v1428_v38, %v429_v4  ;;  %1257 = vrcp.f32 %v937_v5 }
 0x4b5   : > { %v569_v11 = vpop.permute.xlu1 %568  ;;  %v846_v34 = vpop.permute.xlu0 %845 }
 0x4b6   : > { %v1256_v9 = vpop.eup %1255  ;;  %479 = vst.msk [vmem:[#allocation4] sm:$0xff] %vm326_vm0, %v478_v8  ;;  %v571_v17 = vmul.f32 %v569_v11, %v565_v16  ;;  %v848_v35 = vmul.f32 %v846_v34, %v842_v33 }
 0x4b7   : > { %923 = vperm.xlu0 %1233, %v1256_v9  }
 0x4b9   : > { %v709_v12 = vpop.permute.xlu1 %708 }
 0x4ba   : > { %v711_v27 = vmul.f32 %v709_v12, %v705_v26 }
 0x4bb   : > { %v957_v6 = vld [vmem:[#allocation3 + $0x18] sm:$0xff] }
 0x4bc   : > { %1259 = vrcp.f32 %v957_v6 }
 0x4bd   : > { %v906_v13 = vld [vmem:[#allocation4] sm:$0xff] }
 0x4be   : > { %v1258_v7 = vpop.eup %1257 }
 0x4bf   : > { %943 = vperm.xlu0 %1233, %v1258_v7  }
 0x4c6   : > { %v1260_v10 = vpop.eup %1259 }
 0x4c7   : > { %963 = vperm.xlu0 %1233, %v1260_v10  }
 0x4e6   : > { %v910_v14 = vpop.permute.xlu1 %909 }
 0x4e7   : > { %v912_v15 = vmul.f32 %v910_v14, %v906_v13 }
 0x4e9   : > { %v913_v38 = vpack.c.bf16 %v912_v15, %v912_v15 }
 0x4eb   : > { %915 = vst.msk [vmem:[%s1484_s5] sm:$0xf] %vm914_vm6, %v913_v38 }
 0x4ef   : > { %v618_v19 = vpop.f32.mrb[4].mxu0 }
 0x4f0   : > { %v624_v22 = vadd.f32 %v618_v19, %v571_v17  ;;  %v1175_v23 = vpop.f32.mrb[5].mxu0 }
 0x4f1   : > { %v621_v24 = vpop.f32.mrb[6].mxu0 }
 0x4f2   : > { %625 = vst.msk [vmem:[#allocation4 + $0x8] sm:$0xff] %vm326_vm0, %v624_v22  ;;  %v1176_v25 = vpop.f32.mrb[7].mxu0 }
 0x4f7   : > { %v755_v28 = vpop.f32.mrb[8].mxu0 }
 0x4f8   : > { %v761_v29 = vadd.f32 %v755_v28, %v711_v27  ;;  %v1187_v30 = vpop.f32.mrb[9].mxu0 }
 0x4f9   : > { %v758_v31 = vpop.f32.mrb[10].mxu0  ;;  %v920_v43 = vld [vmem:[#allocation4 + $0x8] sm:$0xff] }
 0x4fa   : > { %762 = vst.msk [vmem:[#allocation4 + $0x10] sm:$0xff] %vm326_vm0, %v761_v29  ;;  %v1188_v32 = vpop.f32.mrb[11].mxu0 }
 0x4ff   : > { %v892_v36 = vpop.f32.mrb[12].mxu0 }
 0x500   : > { %v898_v37 = vadd.f32 %v892_v36, %v848_v35  ;;  %v1199_v39 = vpop.f32.mrb[13].mxu0 }
 0x501   : > { %v895_v40 = vpop.f32.mrb[14].mxu0  ;;  %v940_v20 = vld [vmem:[#allocation4 + $0x10] sm:$0xff] }
 0x502   : > { %899 = vst.msk [vmem:[#allocation4 + $0x18] sm:$0xff] %vm326_vm0, %v898_v37  ;;  %v1200_v41 = vpop.f32.mrb[15].mxu0 }
 0x509   : > { %v960_v0 = vld [vmem:[#allocation4 + $0x18] sm:$0xff] }
 0x536   : > { %v924_v42 = vpop.permute.xlu0 %923 }
 0x537   : > { %v926_v44 = vmul.f32 %v924_v42, %v920_v43 }
 0x539   : > { %v1134_v45 = vpack.c.bf16 %v926_v44, %v926_v44 }
 0x53b   : > { %931 = vrot.lane.b32.xlu1 %v1134_v45, %s1291_s25 }
 0x53e   : > { %v944_v18 = vpop.permute.xlu0 %943 }
 0x53f   : > { %v946_v21 = vmul.f32 %v944_v18, %v940_v20 }
 0x541   : > { %v1135_v46 = vpack.c.bf16 %v946_v21, %v946_v21 }
 0x543   : > { %951 = vrot.lane.b32.xlu1 %v1135_v46, %s1290_s24 }
 0x546   : > { %v964_v47 = vpop.permute.xlu0 %963 }
 0x547   : > { %v966_v48 = vmul.f32 %v964_v47, %v960_v0 }
 0x549   : > { %v1136_v49 = vpack.c.bf16 %v966_v48, %v966_v48 }
 0x54b   : > { %971 = vrot.lane.b32.xlu1 %v1136_v49, %s1289_s23 }
 0x5ad   : > { %v932_v50 = vpop.permute.xlu1 %931 }
 0x5ae   : > { %935 = vst.msk [vmem:[%s1484_s5] sm:$0xf] %vm934_vm7, %v932_v50 }
 0x5b5   : > { %v952_v51 = vpop.permute.xlu1 %951 }
 0x5b6   : > { %955 = vst.msk [vmem:[%s1484_s5] sm:$0xf] %vm954_vm8, %v952_v51 }
 0x5bd   : > { %v972_v52 = vpop.permute.xlu1 %971 }
 0x5be   : > { %975 = vst.msk [vmem:[%s1484_s5] sm:$0xf] %vm974_vm9, %v972_v52 }
 0x5bf PF: > { %s13_s14 = sadd.s32 1, %s1283_s14   ;;  %s1509_s12 = smov %s1279_s13 }
 0x5c0   : > { %p10_p5 = scmp.ge.s32.totalorder %s13_s14, 4   ;;  %s1510_s13 = smov %s1512_s15 }
 0x5c2   :  { %12 = sbr.rel (!%p10_p5) target bundleno = 2 (0x2), region = 95 }

// kernel: gpt_forward.21
= control target key start
LH: loop header
LB: loop body
LE: loop exit
PB: predicated region body
PF: predicated region fallthrough
CT: control target
= control target key end

     0   :  { %s347_s0 = inlined_call_operand.vmem [shape: bf16[16,128], index: 0, kind: input, shape index: {}]   ;;  %s348_s1 = inlined_call_operand.vmem [shape: bf16[128,128], index: 1, kind: input, shape index: {}]   ;;  %s349_s2 = inlined_call_operand.vmem [shape: f32[1,128], index: 2, kind: input, shape index: {}]   ;;  %s350_s3 = inlined_call_operand.vmem [shape: f32[1,128], index: 3, kind: input, shape index: {}]   ;;  %s351_s4 = inlined_call_operand.hbm [shape: f32[16,128], index: 4, kind: output, shape index: {}]  }
   0x1   :  { %v199_v0 = vld [vmem:[%s347_s0] sm:$0xff]  }
   0x2   :  { %v200_v1 = vunpack.c.l.bf16 %v199_v0  ;;  %v201_v2 = vunpack.c.h.bf16 %v199_v0 }
   0x4   :  { %23 = vadd.xlane.f32.xlu0 %v200_v1 }
   0x5   :  { %9 = vsyncpa [#allocation3], 0  ;;  %v236_v3 = vld [vmem:[%s348_s1] sm:$0xff]   ;;  %v272_v4 = vmov 0.0   ;;  %v237_v13 = vld [vmem:[%s348_s1 + $0x8] sm:$0xff]   ;;  %vm273_vm0 = vmmov 0  }
   0x6   :  { %211 = vmatprep.subr.bf16.mxu0 %v272_v4  ;;  %v238_v14 = vld [vmem:[%s348_s1 + $0x10] sm:$0xff]   ;;  %v239_v15 = vld [vmem:[%s348_s1 + $0x18] sm:$0xff]   ;;  %v240_v16 = vld [vmem:[%s348_s1 + $0x20] sm:$0xff]   ;;  %227 = vmatprep.mubr.msk.bf16.mxu0 %vm273_vm0, %v272_v4  ;;  %s274_s9 = smov [#allocation2]  }
   0x7   :  { %212 = vmatpush3.bf16.msra.mxu0 %v236_v3  ;;  %v241_v17 = vld [vmem:[%s348_s1 + $0x28] sm:$0xff]   ;;  %v242_v18 = vld [vmem:[%s348_s1 + $0x30] sm:$0xff]   ;;  %v243_v19 = vld [vmem:[%s348_s1 + $0x38] sm:$0xff]   ;;  %s177_s10 = sshll.u32 %s274_s9, 4  ;;  %s178_s10 = int_to_ptr.vmem [resolvable:$true] %s177_s10 }
   0x8   :  { %25 = vadd.xlane.f32.xlu0 %v201_v2  ;;  %213 = vmatprep.subr.bf16.mxu0 %v272_v4  ;;  %v188_v28 = vld [vmem:[%s349_s2] ss:$0 sm:$0xff]  ;;  %s248_s2 = scalar_lea.vmem %s178_s10, 256  ;;  %p253_p1 = scmp.lt.s32.totalorder %s178_s10, %s178_s10 }
   0x9   :  { %v189_v32 = vld [vmem:[%s350_s3] ss:$0 sm:$0xff]  ;;  %p249_p0 = scmp.ne.s32.totalorder %s178_s10, %s248_s2  ;;  %p254_p2 = scmp.lt.s32.totalorder %s248_s2, %s248_s2 }
   0xb   :  { %214 = vmatpush3.bf16.msra.mxu0 %v237_v13  ;;  %p255_p3 = por %p254_p2, %p253_p1 }
   0xc   :  { %215 = vmatprep.subr.bf16.mxu0 %v272_v4 }
   0xd   :  { %p256_p4 = pnand %p255_p3, %p249_p0 }
   0xf   :  { %216 = vmatpush3.bf16.msra.mxu0 %v238_v14 }
  0x10   :  { %217 = vmatprep.subr.bf16.mxu0 %v272_v4 }
  0x13   :  { %218 = vmatpush3.bf16.msra.mxu0 %v239_v15 }
  0x14   :  { %219 = vmatprep.subr.bf16.mxu0 %v272_v4 }
  0x17   :  { %220 = vmatpush3.bf16.msra.mxu0 %v240_v16 }
  0x18   :  { %221 = vmatprep.subr.bf16.mxu0 %v272_v4 }
  0x1b   :  { %222 = vmatpush3.bf16.msra.mxu0 %v241_v17 }
  0x1c   :  { %223 = vmatprep.subr.bf16.mxu0 %v272_v4 }
  0x1f   :  { %224 = vmatpush3.bf16.msra.mxu0 %v242_v18 }
  0x20   :  { %225 = vmatprep.subr.bf16.mxu0 %v272_v4 }
  0x23   :  { %226 = vmatpush3.bf16.msra.mxu0 %v243_v19 }
  0x91   :  { %v24_v5 = vpop.xlane.xlu0 %23 }
  0x92   :  { %v28_v6 = vmul.f32 0.0078125, %v24_v5 }
  0x94   :  { %v30_v7 = vsub.f32 %v200_v1, %v28_v6 }
  0x95   :  { %v26_v8 = vpop.xlane.xlu0 %25 }
  0x96   :  { %v29_v9 = vmul.f32 0.0078125, %v26_v8  ;;  %v32_v10 = vmul.f32 %v30_v7, %v30_v7 }
  0x98   :  { %v31_v11 = vsub.f32 %v201_v2, %v29_v9  ;;  %34 = vadd.xlane.f32.xlu1 %v32_v10 }
  0x9a   :  { %v33_v12 = vmul.f32 %v31_v11, %v31_v11 }
  0x9c   :  { %36 = vadd.xlane.f32.xlu1 %v33_v12 }
 0x125   :  { %v35_v20 = vpop.xlane.xlu1 %34 }
 0x126   :  { %v38_v21 = vmul.f32 0.0078125, %v35_v20 }
 0x128   :  { %v40_v22 = vadd.f32 1e-05, %v38_v21 }
 0x129   :  { %v37_v23 = vpop.xlane.xlu1 %36 }
 0x12a   :  { %244 = vrsqrt.f32 %v40_v22  ;;  %v39_v24 = vmul.f32 0.0078125, %v37_v23 }
 0x12c   :  { %v41_v25 = vadd.f32 1e-05, %v39_v24 }
 0x12e   :  { %246 = vrsqrt.f32 %v41_v25 }
 0x134   :  { %v245_v26 = vpop.eup %244 }
 0x135   :  { %v44_v27 = vmul.f32 %v245_v26, %v30_v7 }
 0x137   :  { %v53_v31 = vmul.f32 %v188_v28, %v44_v27 }
 0x138   :  { %v247_v29 = vpop.eup %246 }
 0x139   :  { %v45_v30 = vmul.f32 %v247_v29, %v31_v11  ;;  %v62_v34 = vadd.f32 %v189_v32, %v53_v31 }
 0x13b   :  { %v54_v33 = vmul.f32 %v188_v28, %v45_v30 }
 0x13d   :  { %v63_v35 = vadd.f32 %v189_v32, %v54_v33 }
 0x13f   :  { %v64_v36 = vpack.c.bf16 %v63_v35, %v62_v34 }
 0x141   :  { %228 = vmatmul.mubr.bf16.vlgmr.msra.gmra.mrb[0].mxu0 %v64_v36 }
 0x214   :  { %v163_v37 = vpop.f32.mrb[0].mxu0 }
 0x215   :  { %170 = vst [vmem:[#allocation2] sm:$0xff] %v163_v37  ;;  %v229_v38 = vpop.f32.mrb[1].mxu0 }
 0x216   :  { %v166_v39 = vpop.f32.mrb[2].mxu0 }
 0x217   :  { %171 = vst [vmem:[#allocation2 + $0x8] sm:$0xff] %v166_v39  ;;  %v230_v40 = vpop.f32.mrb[3].mxu0 }
 0x218   :  { %259 = shalt.err (!%p256_p4)
}
 0x219   :  { %s260_s12 = scalar_lea.hbm %s351_s4, 256 }
 0x21a   :  { %p261_p5 = scmp.ne.s32.totalorder %s351_s4, %s260_s12  ;;  %p264_p6 = scmp.lt.u32.totalorder %s260_s12, %s351_s4 }
 0x21c   :  { %p266_p7 = pnand %p264_p6, %p261_p5 }
 0x21e   :  { %269 = shalt.err (!%p266_p7)
}
 0x21f   :  { %s275_s17 = smov 128   ;;  %s276_s18 = smov 8  }
 0x220   :  { %183 = dma.vmem_to_hbm [thread:$0]  %s178_s10, 256, %s351_s4, [#allocation3], %s275_s17, %s275_s17, %s276_s18  }
 0x221   :  { %270 = dma.done.wait [#allocation3], 256  }
 0x222   :  { %271 = vsyncadd [#allocation3], 4294967040 }
 0x223   :  { %187 = vsyncpa [#allocation3], 1 }

// kernel: gpt_forward.15
= control target key start
LH: loop header
LB: loop body
LE: loop exit
PB: predicated region body
PF: predicated region fallthrough
CT: control target
= control target key end

     0   :  { %s681_s1 = inlined_call_operand.vmem [shape: bf16[512,128], index: 1, kind: input, shape index: {}]   ;;  %s682_s0 = inlined_call_operand.vmem [shape: bf16[16,512], index: 0, kind: input, shape index: {}]   ;;  %s683_s2 = inlined_call_operand.vmem [shape: f32[1,128], index: 2, kind: input, shape index: {}]   ;;  %s684_s3 = inlined_call_operand.vmem [shape: bf16[16,128], index: 3, kind: input, shape index: {}]   ;;  %s685_s4 = inlined_call_operand.vmem [shape: bf16[16,128], index: 4, kind: output, shape index: {}]  }
   0x1   :  { %v501_v0 = vld [vmem:[%s681_s1 + $0x40] sm:$0xff]   ;;  %v505_v4 = vld [vmem:[%s681_s1 + $0x48] sm:$0xff]   ;;  %v509_v8 = vld [vmem:[%s681_s1 + $0x50] sm:$0xff]  }
   0x2   :  { %v502_v1 = vld [vmem:[%s681_s1 + $0xc0] sm:$0xff]   ;;  %457 = vmatprep.subr.bf16.mxu0 %v501_v0  ;;  %v506_v5 = vld [vmem:[%s681_s1 + $0xc8] sm:$0xff]   ;;  %v510_v9 = vld [vmem:[%s681_s1 + $0xd0] sm:$0xff]  }
   0x3   :  { %v503_v2 = vld [vmem:[%s681_s1] sm:$0xff]   ;;  %479 = vmatprep.subr.bf16.mxu1 %v502_v1  ;;  %v507_v6 = vld [vmem:[%s681_s1 + $0x8] sm:$0xff]   ;;  %v511_v10 = vld [vmem:[%s681_s1 + $0x10] sm:$0xff]  }
   0x4   :  { %v504_v3 = vld [vmem:[%s681_s1 + $0x80] sm:$0xff]   ;;  %458 = vmatpush3.bf16.msra.mxu0 %v503_v2  ;;  %v508_v7 = vld [vmem:[%s681_s1 + $0x88] sm:$0xff]   ;;  %v512_v11 = vld [vmem:[%s681_s1 + $0x90] sm:$0xff]  }
   0x5   :  { %480 = vmatpush3.bf16.msra.mxu1 %v504_v3  ;;  %459 = vmatprep.subr.bf16.mxu0 %v505_v4  ;;  %v513_v12 = vld [vmem:[%s681_s1 + $0x58] sm:$0xff]   ;;  %v517_v16 = vld [vmem:[%s681_s1 + $0x60] sm:$0xff]   ;;  %v521_v20 = vld [vmem:[%s681_s1 + $0x68] sm:$0xff]  }
   0x6   :  { %481 = vmatprep.subr.bf16.mxu1 %v506_v5  ;;  %v514_v13 = vld [vmem:[%s681_s1 + $0xd8] sm:$0xff]   ;;  %v518_v17 = vld [vmem:[%s681_s1 + $0xe0] sm:$0xff]   ;;  %v522_v21 = vld [vmem:[%s681_s1 + $0xe8] sm:$0xff]  }
   0x7   :  { %v515_v14 = vld [vmem:[%s681_s1 + $0x18] sm:$0xff]   ;;  %v519_v18 = vld [vmem:[%s681_s1 + $0x20] sm:$0xff]   ;;  %v523_v22 = vld [vmem:[%s681_s1 + $0x28] sm:$0xff]  }
   0x8   :  { %460 = vmatpush3.bf16.msra.mxu0 %v507_v6  ;;  %v516_v15 = vld [vmem:[%s681_s1 + $0x98] sm:$0xff]   ;;  %v520_v19 = vld [vmem:[%s681_s1 + $0xa0] sm:$0xff]   ;;  %v524_v23 = vld [vmem:[%s681_s1 + $0xa8] sm:$0xff]  }
   0x9   :  { %482 = vmatpush3.bf16.msra.mxu1 %v508_v7  ;;  %461 = vmatprep.subr.bf16.mxu0 %v509_v8  ;;  %v525_v24 = vld [vmem:[%s681_s1 + $0x70] sm:$0xff]   ;;  %v529_v28 = vld [vmem:[%s681_s1 + $0x78] sm:$0xff]   ;;  %v407_v38 = vld [vmem:[%s683_s2] ss:$0 sm:$0xff] }
   0xa   :  { %483 = vmatprep.subr.bf16.mxu1 %v510_v9  ;;  %v526_v25 = vld [vmem:[%s681_s1 + $0xf0] sm:$0xff]   ;;  %v530_v29 = vld [vmem:[%s681_s1 + $0xf8] sm:$0xff]   ;;  %v449_v44 = vld [vmem:[%s684_s3] sm:$0xff]  }
   0xb   :  { %v527_v26 = vld [vmem:[%s681_s1 + $0x30] sm:$0xff]   ;;  %v531_v30 = vld [vmem:[%s681_s1 + $0x38] sm:$0xff]   ;;  %v450_v52 = vunpack.c.l.bf16 %v449_v44  ;;  %v451_v54 = vunpack.c.h.bf16 %v449_v44 }
   0xc   :  { %462 = vmatpush3.bf16.msra.mxu0 %v511_v10  ;;  %v528_v27 = vld [vmem:[%s681_s1 + $0xb0] sm:$0xff]   ;;  %v532_v31 = vld [vmem:[%s681_s1 + $0xb8] sm:$0xff]  }
   0xd   :  { %484 = vmatpush3.bf16.msra.mxu1 %v512_v11  ;;  %463 = vmatprep.subr.bf16.mxu0 %v513_v12  ;;  %v533_v32 = vld [vmem:[%s682_s0] ss:$16 sps:$4 sm:$0xff]   ;;  %v535_v33 = vld [vmem:[%s682_s0 + $0x4] ss:$16 sps:$4 sm:$0xff]   ;;  %v536_v34 = vld [vmem:[%s682_s0 + $0x8] ss:$16 sps:$4 sm:$0xff]  }
   0xe   :  { %485 = vmatprep.subr.bf16.mxu1 %v514_v13  ;;  %v538_v35 = vld [vmem:[%s682_s0 + $0xc] ss:$16 sps:$4 sm:$0xff]   ;;  %337 = vmatprep.mubr.bf16.mxu0 %v535_v33 }
   0xf   :  { %378 = vmatprep.mubr.bf16.mxu1 %v538_v35 }
  0x10   :  { %464 = vmatpush3.bf16.msra.mxu0 %v515_v14 }
  0x11   :  { %486 = vmatpush3.bf16.msra.mxu1 %v516_v15  ;;  %465 = vmatprep.subr.bf16.mxu0 %v517_v16 }
  0x12   :  { %487 = vmatprep.subr.bf16.mxu1 %v518_v17 }
  0x14   :  { %466 = vmatpush3.bf16.msra.mxu0 %v519_v18 }
  0x15   :  { %488 = vmatpush3.bf16.msra.mxu1 %v520_v19  ;;  %467 = vmatprep.subr.bf16.mxu0 %v521_v20 }
  0x16   :  { %489 = vmatprep.subr.bf16.mxu1 %v522_v21 }
  0x18   :  { %468 = vmatpush3.bf16.msra.mxu0 %v523_v22 }
  0x19   :  { %490 = vmatpush3.bf16.msra.mxu1 %v524_v23  ;;  %469 = vmatprep.subr.bf16.mxu0 %v525_v24 }
  0x1a   :  { %491 = vmatprep.subr.bf16.mxu1 %v526_v25 }
  0x1c   :  { %470 = vmatpush3.bf16.msra.mxu0 %v527_v26 }
  0x1d   :  { %492 = vmatpush3.bf16.msra.mxu1 %v528_v27  ;;  %471 = vmatprep.subr.bf16.mxu0 %v529_v28 }
  0x1e   :  { %493 = vmatprep.subr.bf16.mxu1 %v530_v29 }
  0x20   :  { %472 = vmatpush3.bf16.msra.mxu0 %v531_v30 }
  0x21   :  { %494 = vmatpush3.bf16.msra.mxu1 %v532_v31 }
  0x23   :  { %338 = vmatmul.mubr.bf16.vlgmr.msra.gmra.mrb[0].mxu0 %v533_v32 }
  0x24   :  { %379 = vmatmul.mubr.bf16.vlgmr.msra.gmra.mrb[0].mxu1 %v536_v34 }
  0xf6   :  { %v473_v36 = vpop.f32.mrb[0].mxu0 }
  0xf7   :  { %v495_v37 = vpop.f32.mrb[0].mxu1  ;;  %v474_v39 = vpop.f32.mrb[1].mxu0 }
  0xf8   :  { %v475_v40 = vadd.f32 %v474_v39, %v473_v36  ;;  %v496_v41 = vpop.f32.mrb[1].mxu1  ;;  %v476_v42 = vpop.f32.mrb[2].mxu0 }
  0xf9   :  { %v497_v43 = vadd.f32 %v496_v41, %v495_v37  ;;  %v498_v45 = vpop.f32.mrb[2].mxu1  ;;  %v477_v46 = vpop.f32.mrb[3].mxu0 }
  0xfa   :  { %v340_v47 = vadd.f32 %v475_v40, %v407_v38  ;;  %v478_v48 = vadd.f32 %v477_v46, %v476_v42  ;;  %v499_v49 = vpop.f32.mrb[3].mxu1 }
  0xfb   :  { %v500_v50 = vadd.f32 %v499_v49, %v498_v45 }
  0xfc   :  { %v381_v51 = vadd.f32 %v497_v43, %v340_v47  ;;  %v343_v53 = vadd.f32 %v478_v48, %v407_v38 }
  0xfe   :  { %v384_v55 = vadd.f32 %v500_v50, %v343_v53  ;;  %v391_v56 = vadd.f32 %v450_v52, %v381_v51 }
 0x100   :  { %v392_v57 = vadd.f32 %v451_v54, %v384_v55 }
 0x102   :  { %v455_v58 = vpack.c.bf16 %v392_v57, %v391_v56 }
 0x104   :  { %456 = vst [vmem:[%s685_s4] sm:$0xff] %v455_v58  }

</bundles_post_ra>
